<compile_context>
chip_gen: v7x
topology: tpu7x:2x2x1
jax: 0.10.0
libtpu: 0.0.40
codegen_flags: <defaults>
</compile_context>

<pallas_src>
import functools
from dataclasses import dataclass

import jax
import jax.numpy as jnp
from jax.experimental import pallas as pl
from jax.experimental.pallas import tpu as pltpu

NLP = 128  # lane-padded regressor output width


# ----------------------------- fused, layer-streamed Pallas kernel -----------------------------

def _bert_layer_kernel(emb_ref, mask_ref,
                       emb_g_ref, emb_b_ref,
                       wq_ref, bq_ref, wk_ref, bk_ref, wv_ref, bv_ref,
                       wo_ref, bo_ref,
                       ln1_g_ref, ln1_b_ref,
                       wi_ref, bi_ref, wo2_ref, bo2_ref,
                       ln2_g_ref, ln2_b_ref,
                       pool_w_ref, pool_b_ref,
                       reg_w_ref, reg_b_ref,
                       out_ref,
                       x_scr,
                       *, num_heads, seq_len, eps, mxu_dtype):
    layer = pl.program_id(1)
    nh = num_heads
    RB, H = x_scr.shape                       # rows-per-block, hidden
    Dh = H // nh
    scale = 1.0 / (Dh ** 0.5)

    def mm(a, w):
        # 2-D MXU matmul, bf16 operands (by default), f32 accumulation.
        return jnp.dot(a.astype(mxu_dtype), w.astype(mxu_dtype),
                       preferred_element_type=jnp.float32)

    def bmm(a, w, dims):
        # batched MXU matmul (head axis = batch dim), f32 accumulation.
        return jax.lax.dot_general(a.astype(mxu_dtype), w.astype(mxu_dtype), dims,
                                   preferred_element_type=jnp.float32)

    # 'hnk,hkd->hnd' (also used for ctx 'hqk,hkd->hqd' and out-proj 'hnd,hdk->hnk')
    HEAD_DIMS = (((2,), (1,)), ((0,), (0,)))
    # 'hqd,hkd->hqk'
    SCORE_DIMS = (((2,), (2,)), ((0,), (0,)))

    def layernorm(y, g, b):
        mu = jnp.mean(y, axis=-1, keepdims=True)
        var = jnp.mean(jnp.square(y - mu), axis=-1, keepdims=True)
        return (y - mu) * jax.lax.rsqrt(var + eps) * g + b

    # ---- layer 0: embedding LayerNorm into the persistent activation scratch ----
    @pl.when(layer == 0)
    def _():
        x_scr[...] = layernorm(emb_ref[0], emb_g_ref[...], emb_b_ref[...])

    x = x_scr[...]                                                     # (RB, H) f32

    # ---- self attention (all head math lane-aligned, batched over the head axis) ----
    xh = jnp.broadcast_to(x[None].astype(mxu_dtype), (nh, RB, H))      # hoisted, reused 3x
    q = bmm(xh, wq_ref[0], HEAD_DIMS) + bq_ref[0]                      # (nh, RB, Dh)
    k = bmm(xh, wk_ref[0], HEAD_DIMS) + bk_ref[0]
    v = bmm(xh, wv_ref[0], HEAD_DIMS) + bv_ref[0]

    s = bmm(q, k, SCORE_DIMS) * scale + mask_ref[0]                    # (nh, RB, RB)
    s = s - jnp.max(s, axis=-1, keepdims=True)
    p = jnp.exp(s)
    p = p * pl.reciprocal(jnp.sum(p, axis=-1, keepdims=True), approx=True)
    ctx = bmm(p, v, HEAD_DIMS)                                         # (nh, RB, Dh)

    # output projection: one batched matmul over heads (flops == single (RB,H)@(H,H)),
    # merged with a cheap leading-axis sum -> no lane shuffles, no per-head accumulate loop.
    attn = jnp.sum(bmm(ctx, wo_ref[0], HEAD_DIMS), axis=0) + bo_ref[0]   # (RB, H)
    x = layernorm(attn + x, ln1_g_ref[0], ln1_b_ref[0])                  # residual folded in

    # ---- feed-forward ----
    # TODO(synk): HF BERT uses exact erf-GELU; tanh approximation kept for Mosaic-safe lowering.
    hmid = jax.nn.gelu(mm(x, wi_ref[0]) + bi_ref[0], approximate=True)
    x = layernorm(mm(hmid, wo2_ref[0]) + bo2_ref[0] + x, ln2_g_ref[0], ln2_b_ref[0])

    x_scr[...] = x

    # ---- last layer: pooler (Linear+tanh on [CLS]) + regressor; dropout(p=0.3) = identity ----
    @pl.when(layer == pl.num_programs(1) - 1)
    def _():
        bpb = RB // seq_len
        if bpb > 1:
            cls = jnp.concatenate([x[i * seq_len:i * seq_len + 1, :] for i in range(bpb)],
                                  axis=0)                              # (bpb, H)
        else:
            cls = x[0:1, :]
        pooled = jnp.tanh(mm(cls, pool_w_ref[...]) + pool_b_ref[...])  # (bpb, H)
        logits = mm(pooled, reg_w_ref[...]) + reg_b_ref[...]           # (bpb, 128) lane-dense
        out_ref[...] = logits.reshape(out_ref.shape)


# ----------------------------- model definition -----------------------------

@dataclass
class BertConfig:
    vocab_size: int = 32
    hidden_size: int = 32
    num_layers: int = 2
    num_heads: int = 4
    intermediate_size: int = 64
    max_position_embeddings: int = 16
    type_vocab_size: int = 2
    num_labels: int = 6


def init_params(key, cfg: BertConfig):
    H, I, L, nh = cfg.hidden_size, cfg.intermediate_size, cfg.num_layers, cfg.num_heads
    Dh = H // nh
    std = 0.02
    keys = iter(jax.random.split(key, 16))

    def nrm(shape, dtype=jnp.bfloat16):
        # matmul weights stored bf16 (halves weight DMA / VMEM); LN params & biases stay f32.
        return (std * jax.random.normal(next(keys), shape, dtype=jnp.float32)).astype(dtype)

    reg_w = jnp.zeros((H, NLP), jnp.float32)
    reg_w = reg_w.at[:, :cfg.num_labels].set(
        std * jax.random.normal(next(keys), (H, cfg.num_labels), dtype=jnp.float32))

    return {
        "word_emb": nrm((cfg.vocab_size, H), jnp.float32),
        "pos_emb": nrm((cfg.max_position_embeddings, H), jnp.float32),
        "type_emb": nrm((cfg.type_vocab_size, H), jnp.float32),
        "emb_ln_g": jnp.ones((1, H), jnp.float32),
        "emb_ln_b": jnp.zeros((1, H), jnp.float32),
        # per-head attention weights: (L, nh, H, Dh) so the head axis is a dot_general batch dim
        "w_q": nrm((L, nh, H, Dh)),
        "b_q": jnp.zeros((L, nh, 1, Dh), jnp.float32),
        "w_k": nrm((L, nh, H, Dh)),
        "b_k": jnp.zeros((L, nh, 1, Dh), jnp.float32),
        "w_v": nrm((L, nh, H, Dh)),
        "b_v": jnp.zeros((L, nh, 1, Dh), jnp.float32),
        "w_attn_out": nrm((L, nh, Dh, H)),
        "b_attn_out": jnp.zeros((L, 1, H), jnp.float32),
        "ln1_g": jnp.ones((L, 1, H), jnp.float32),
        "ln1_b": jnp.zeros((L, 1, H), jnp.float32),
        "w_ffn_in": nrm((L, H, I)),
        "b_ffn_in": jnp.zeros((L, 1, I), jnp.float32),
        "w_ffn_out": nrm((L, I, H)),
        "b_ffn_out": jnp.zeros((L, 1, H), jnp.float32),
        "ln2_g": jnp.ones((L, 1, H), jnp.float32),
        "ln2_b": jnp.zeros((L, 1, H), jnp.float32),
        "pool_w": nrm((H, H)),
        "pool_b": jnp.zeros((1, H), jnp.float32),
        "reg_w": reg_w.astype(jnp.bfloat16),           # lane-padded to 128
        "reg_b": jnp.zeros((1, NLP), jnp.float32),     # lane-padded to 128
    }


def bert_regression_forward(params, input_ids, attention_mask, token_type_ids, cfg: BertConfig,
                            num_batch_blocks=None, mxu_dtype=jnp.bfloat16):
    B, S = input_ids.shape
    H, L, nh = cfg.hidden_size, cfg.num_layers, cfg.num_heads
    NL = cfg.num_labels

    # 2 batch blocks by default (one per v7x TensorCore); pass 1 on v5e/v6e to pack the whole
    # batch into a single row slab per grid step.
    NB = num_batch_blocks if num_batch_blocks is not None else min(B, 2)
    assert B % NB == 0
    BPB = B // NB          # sequences per batch block
    RB = BPB * S           # rows per batch block

    # --- embeddings (gathers are glue; everything downstream runs in the fused kernel) ---
    pos_ids = jnp.arange(S, dtype=jnp.int32)[None, :]
    emb = (params["word_emb"][input_ids]
           + params["pos_emb"][pos_ids]
           + params["type_emb"][token_type_ids]).astype(jnp.float32)          # (B, S, H)
    emb = emb.reshape(NB, RB, H)

    # block-diagonal + key-padding additive mask, matching HF BERT's (1 - mask) * -10000 over
    # keys; cross-sequence attention within a packed batch block is also masked out.
    seq_id = jnp.arange(RB, dtype=jnp.int32) // S
    same_seq = (seq_id[:, None] == seq_id[None, :]).astype(jnp.float32)       # (RB, RB)
    key_ok = attention_mask.astype(jnp.float32).reshape(NB, RB)               # (NB, RB)
    add_mask = (1.0 - same_seq[None] * key_ok[:, None, :]) * -10000.0         # (NB, RB, RB)

    per_layer_inputs = [
        params["w_q"], params["b_q"], params["w_k"], params["b_k"],
        params["w_v"], params["b_v"],
        params["w_attn_out"], params["b_attn_out"],
        params["ln1_g"], params["ln1_b"],
        params["w_ffn_in"], params["b_ffn_in"],
        params["w_ffn_out"], params["b_ffn_out"],
        params["ln2_g"], params["ln2_b"],
    ]
    const_head = [params["emb_ln_g"], params["emb_ln_b"]]
    const_tail = [params["pool_w"], params["pool_b"], params["reg_w"], params["reg_b"]]

    def per_block_spec(shape):
        nd = len(shape)
        return pl.BlockSpec((1,) + tuple(shape[1:]), lambda b, l, _nd=nd: (b,) + (0,) * (_nd - 1))

    def per_layer_spec(shape):
        nd = len(shape)
        return pl.BlockSpec((1,) + tuple(shape[1:]), lambda b, l, _nd=nd: (l,) + (0,) * (_nd - 1))

    def const_spec(shape):
        nd = len(shape)
        return pl.BlockSpec(tuple(shape), lambda b, l, _nd=nd: (0,) * _nd)

    in_specs = ([per_block_spec(emb.shape), per_block_spec(add_mask.shape)]
                + [const_spec(w.shape) for w in const_head]
                + [per_layer_spec(w.shape) for w in per_layer_inputs]
                + [const_spec(w.shape) for w in const_tail])

    kernel = functools.partial(
        _bert_layer_kernel,
        num_heads=nh, seq_len=S, eps=1e-12, mxu_dtype=mxu_dtype)

    logits_pad = pl.pallas_call(
        kernel,
        out_shape=jax.ShapeDtypeStruct((NB, BPB, NLP), jnp.float32),
        grid=(NB, L),
        in_specs=in_specs,
        out_specs=pl.BlockSpec((1, BPB, NLP), lambda b, l: (b, 0, 0)),
        scratch_shapes=[pltpu.VMEM((RB, H), jnp.float32)],
        compiler_params=pltpu.CompilerParams(
            dimension_semantics=("parallel", "arbitrary"),
            vmem_limit_bytes=32 * 1024 * 1024),
    )(emb, add_mask, *const_head, *per_layer_inputs, *const_tail)

    return logits_pad.reshape(B, NLP)[:, :NL]


# ----------------------------- main -----------------------------

if __name__ == "__main__":
    cfg = BertConfig()
    key = jax.random.PRNGKey(0)
    k_params, k_ids, k_types = jax.random.split(key, 3)

    params = init_params(k_params, cfg)

    B, S = 2, 8
    input_ids = jax.random.randint(k_ids, (B, S), 0, cfg.vocab_size, dtype=jnp.int32)
    token_type_ids = jax.random.randint(k_types, (B, S), 0, cfg.type_vocab_size, dtype=jnp.int32)
    attention_mask = jnp.array(
        [[1, 1, 1, 1, 1, 1, 1, 1],
         [1, 1, 1, 1, 1, 1, 0, 0]], dtype=jnp.int32)

    # mxu_dtype=bf16 by default (v5e/v6e/v7x MXUs are bf16-native); pass jnp.float32 for
    # strict-parity verification runs.
    logits = bert_regression_forward(params, input_ids, attention_mask, token_type_ids, cfg)
    logits = jax.block_until_ready(logits)
    assert logits.shape == (B, cfg.num_labels)
    assert bool(jnp.all(jnp.isfinite(logits)))
    print("KERNEL_OK")
</pallas_src>

<mosaic_0001>
module attributes {stable_mosaic.version = 11 : i64} {
  func.func @_bert_layer_kernel(%arg0: i32, %arg1: i32, %arg2: memref<1x8x32xf32, #tpu.memory_space<vmem>>, %arg3: memref<1x8x8xf32, #tpu.memory_space<vmem>>, %arg4: memref<1x32xf32, #tpu.memory_space<vmem>>, %arg5: memref<1x32xf32, #tpu.memory_space<vmem>>, %arg6: memref<1x4x32x8xbf16, #tpu.memory_space<vmem>>, %arg7: memref<1x4x1x8xf32, #tpu.memory_space<vmem>>, %arg8: memref<1x4x32x8xbf16, #tpu.memory_space<vmem>>, %arg9: memref<1x4x1x8xf32, #tpu.memory_space<vmem>>, %arg10: memref<1x4x32x8xbf16, #tpu.memory_space<vmem>>, %arg11: memref<1x4x1x8xf32, #tpu.memory_space<vmem>>, %arg12: memref<1x4x8x32xbf16, #tpu.memory_space<vmem>>, %arg13: memref<1x1x32xf32, #tpu.memory_space<vmem>>, %arg14: memref<1x1x32xf32, #tpu.memory_space<vmem>>, %arg15: memref<1x1x32xf32, #tpu.memory_space<vmem>>, %arg16: memref<1x32x64xbf16, #tpu.memory_space<vmem>>, %arg17: memref<1x1x64xf32, #tpu.memory_space<vmem>>, %arg18: memref<1x64x32xbf16, #tpu.memory_space<vmem>>, %arg19: memref<1x1x32xf32, #tpu.memory_space<vmem>>, %arg20: memref<1x1x32xf32, #tpu.memory_space<vmem>>, %arg21: memref<1x1x32xf32, #tpu.memory_space<vmem>>, %arg22: memref<32x32xbf16, #tpu.memory_space<vmem>>, %arg23: memref<1x32xf32, #tpu.memory_space<vmem>>, %arg24: memref<32x128xbf16, #tpu.memory_space<vmem>>, %arg25: memref<1x128xf32, #tpu.memory_space<vmem>>, %arg26: memref<1x1x128xf32, #tpu.memory_space<vmem>>, %arg27: memref<8x32xf32, #tpu.memory_space<vmem>>) attributes {dimension_semantics = [#tpu.dimension_semantics<parallel>, #tpu.dimension_semantics<arbitrary>], iteration_bounds = array<i64: 2, 2>, scalar_prefetch = 0 : i64, scratch_operands = 1 : i64, tpu.core_type = #tpu.core_type<tc>, window_params = [{transform_indices = @transform_0, window_bounds = array<i64: 1, 8, 32>}, {transform_indices = @transform_1, window_bounds = array<i64: 1, 8, 8>}, {pipeline_mode = #tpu.pipeline_mode<synchronous>, transform_indices = @transform_2, window_bounds = array<i64: 1, 32>}, {pipeline_mode = #tpu.pipeline_mode<synchronous>, transform_indices = @transform_3, window_bounds = array<i64: 1, 32>}, {transform_indices = @transform_4, window_bounds = array<i64: 1, 4, 32, 8>}, {transform_indices = @transform_5, window_bounds = array<i64: 1, 4, 1, 8>}, {transform_indices = @transform_6, window_bounds = array<i64: 1, 4, 32, 8>}, {transform_indices = @transform_7, window_bounds = array<i64: 1, 4, 1, 8>}, {transform_indices = @transform_8, window_bounds = array<i64: 1, 4, 32, 8>}, {transform_indices = @transform_9, window_bounds = array<i64: 1, 4, 1, 8>}, {transform_indices = @transform_10, window_bounds = array<i64: 1, 4, 8, 32>}, {transform_indices = @transform_11, window_bounds = array<i64: 1, 1, 32>}, {transform_indices = @transform_12, window_bounds = array<i64: 1, 1, 32>}, {transform_indices = @transform_13, window_bounds = array<i64: 1, 1, 32>}, {transform_indices = @transform_14, window_bounds = array<i64: 1, 32, 64>}, {transform_indices = @transform_15, window_bounds = array<i64: 1, 1, 64>}, {transform_indices = @transform_16, window_bounds = array<i64: 1, 64, 32>}, {transform_indices = @transform_17, window_bounds = array<i64: 1, 1, 32>}, {transform_indices = @transform_18, window_bounds = array<i64: 1, 1, 32>}, {transform_indices = @transform_19, window_bounds = array<i64: 1, 1, 32>}, {pipeline_mode = #tpu.pipeline_mode<synchronous>, transform_indices = @transform_20, window_bounds = array<i64: 32, 32>}, {pipeline_mode = #tpu.pipeline_mode<synchronous>, transform_indices = @transform_21, window_bounds = array<i64: 1, 32>}, {pipeline_mode = #tpu.pipeline_mode<synchronous>, transform_indices = @transform_22, window_bounds = array<i64: 32, 128>}, {pipeline_mode = #tpu.pipeline_mode<synchronous>, transform_indices = @transform_23, window_bounds = array<i64: 1, 128>}, {transform_indices = @transform_24, window_bounds = array<i64: 1, 1, 128>}]} {
    %c0_i32 = arith.constant 0 : i32
    %0 = arith.cmpi eq, %arg1, %c0_i32 : i32
    %1 = arith.extui %0 : i1 to i32
    %c0_i32_0 = arith.constant 0 : i32
    %2 = arith.cmpi ne, %1, %c0_i32_0 : i32
    scf.if %2 {
      %c0_88 = arith.constant 0 : index
      %c0_89 = arith.constant 0 : index
      %c0_90 = arith.constant 0 : index
      %148 = vector.load %arg2[%c0_88, %c0_89, %c0_90] : memref<1x8x32xf32, #tpu.memory_space<vmem>>, vector<1x8x32xf32>
      %149 = vector.shape_cast %148 : vector<1x8x32xf32> to vector<8x32xf32>
      %c0_91 = arith.constant 0 : index
      %c0_92 = arith.constant 0 : index
      %150 = vector.load %arg4[%c0_91, %c0_92] : memref<1x32xf32, #tpu.memory_space<vmem>>, vector<1x32xf32>
      %c0_93 = arith.constant 0 : index
      %c0_94 = arith.constant 0 : index
      %151 = vector.load %arg5[%c0_93, %c0_94] : memref<1x32xf32, #tpu.memory_space<vmem>>, vector<1x32xf32>
      %cst_95 = arith.constant dense<0.000000e+00> : vector<8xf32>
      %152 = vector.multi_reduction <add>, %149, %cst_95 [1] : vector<8x32xf32> to vector<8xf32>
      %153 = vector.shape_cast %152 : vector<8xf32> to vector<8x1xf32>
      %cst_96 = arith.constant 3.200000e+01 : f32
      %154 = vector.broadcast %cst_96 : f32 to vector<8x1xf32>
      %155 = arith.divf %153, %154 : vector<8x1xf32>
      %156 = vector.broadcast %155 : vector<8x1xf32> to vector<8x32xf32>
      %157 = arith.subf %149, %156 : vector<8x32xf32>
      %158 = arith.mulf %157, %157 : vector<8x32xf32>
      %cst_97 = arith.constant dense<0.000000e+00> : vector<8xf32>
      %159 = vector.multi_reduction <add>, %158, %cst_97 [1] : vector<8x32xf32> to vector<8xf32>
      %160 = vector.shape_cast %159 : vector<8xf32> to vector<8x1xf32>
      %cst_98 = arith.constant 3.200000e+01 : f32
      %161 = vector.broadcast %cst_98 : f32 to vector<8x1xf32>
      %162 = arith.divf %160, %161 : vector<8x1xf32>
      %163 = vector.broadcast %155 : vector<8x1xf32> to vector<8x32xf32>
      %164 = arith.subf %149, %163 : vector<8x32xf32>
      %cst_99 = arith.constant 9.99999996E-13 : f32
      %165 = vector.broadcast %cst_99 : f32 to vector<8x1xf32>
      %166 = arith.addf %162, %165 : vector<8x1xf32>
      %167 = math.rsqrt %166 : vector<8x1xf32>
      %168 = vector.broadcast %167 : vector<8x1xf32> to vector<8x32xf32>
      %169 = arith.mulf %164, %168 : vector<8x32xf32>
      %170 = vector.broadcast %150 : vector<1x32xf32> to vector<8x32xf32>
      %171 = arith.mulf %169, %170 : vector<8x32xf32>
      %172 = vector.broadcast %151 : vector<1x32xf32> to vector<8x32xf32>
      %173 = arith.addf %171, %172 : vector<8x32xf32>
      %c0_100 = arith.constant 0 : index
      %c0_101 = arith.constant 0 : index
      %174 = vector.load %arg27[%c0_100, %c0_101] : memref<8x32xf32, #tpu.memory_space<vmem>>, vector<8x32xf32>
      tpu.vector_store %arg27[%c0_100, %c0_101], %173 {strides = array<i32>} : memref<8x32xf32, #tpu.memory_space<vmem>>, vector<8x32xf32>,
    } else {
    }
    %c0 = arith.constant 0 : index
    %c0_1 = arith.constant 0 : index
    %3 = vector.load %arg27[%c0, %c0_1] : memref<8x32xf32, #tpu.memory_space<vmem>>, vector<8x32xf32>
    %4 = vector.shape_cast %3 : vector<8x32xf32> to vector<1x8x32xf32>
    %5 = arith.truncf %4 : vector<1x8x32xf32> to vector<1x8x32xbf16>
    %6 = vector.shape_cast %5 : vector<1x8x32xbf16> to vector<1x8x32xbf16>
    %7 = vector.broadcast %6 : vector<1x8x32xbf16> to vector<4x8x32xbf16>
    %c0_2 = arith.constant 0 : index
    %c0_3 = arith.constant 0 : index
    %c0_4 = arith.constant 0 : index
    %c0_5 = arith.constant 0 : index
    %8 = vector.load %arg6[%c0_2, %c0_3, %c0_4, %c0_5] : memref<1x4x32x8xbf16, #tpu.memory_space<vmem>>, vector<1x4x32x8xbf16>
    %9 = vector.shape_cast %8 : vector<1x4x32x8xbf16> to vector<4x32x8xbf16>
    %cst = arith.constant dense<0.000000e+00> : vector<4x8x8xf32>
    %10 = tpu.matmul %7, %9, %cst {dimension_numbers = #tpu.dot_dimension_numbers<[2], [1], [1], [2], [0, 0, 0, 1, 1, 2], [0], [0]>} : vector<4x8x32xbf16>, vector<4x32x8xbf16>, vector<4x8x8xf32> -> vector<4x8x8xf32>
    %c0_6 = arith.constant 0 : index
    %c0_7 = arith.constant 0 : index
    %c0_8 = arith.constant 0 : index
    %c0_9 = arith.constant 0 : index
    %11 = vector.load %arg7[%c0_6, %c0_7, %c0_8, %c0_9] : memref<1x4x1x8xf32, #tpu.memory_space<vmem>>, vector<1x4x1x8xf32>
    %12 = vector.shape_cast %11 : vector<1x4x1x8xf32> to vector<4x1x8xf32>
    %13 = vector.broadcast %12 : vector<4x1x8xf32> to vector<4x8x8xf32>
    %14 = arith.addf %10, %13 : vector<4x8x8xf32>
    %c0_10 = arith.constant 0 : index
    %c0_11 = arith.constant 0 : index
    %c0_12 = arith.constant 0 : index
    %c0_13 = arith.constant 0 : index
    %15 = vector.load %arg8[%c0_10, %c0_11, %c0_12, %c0_13] : memref<1x4x32x8xbf16, #tpu.memory_space<vmem>>, vector<1x4x32x8xbf16>
    %16 = vector.shape_cast %15 : vector<1x4x32x8xbf16> to vector<4x32x8xbf16>
    %cst_14 = arith.constant dense<0.000000e+00> : vector<4x8x8xf32>
    %17 = tpu.matmul %7, %16, %cst_14 {dimension_numbers = #tpu.dot_dimension_numbers<[2], [1], [1], [2], [0, 0, 0, 1, 1, 2], [0], [0]>} : vector<4x8x32xbf16>, vector<4x32x8xbf16>, vector<4x8x8xf32> -> vector<4x8x8xf32>
    %c0_15 = arith.constant 0 : index
    %c0_16 = arith.constant 0 : index
    %c0_17 = arith.constant 0 : index
    %c0_18 = arith.constant 0 : index
    %18 = vector.load %arg9[%c0_15, %c0_16, %c0_17, %c0_18] : memref<1x4x1x8xf32, #tpu.memory_space<vmem>>, vector<1x4x1x8xf32>
    %19 = vector.shape_cast %18 : vector<1x4x1x8xf32> to vector<4x1x8xf32>
    %20 = vector.broadcast %19 : vector<4x1x8xf32> to vector<4x8x8xf32>
    %21 = arith.addf %17, %20 : vector<4x8x8xf32>
    %c0_19 = arith.constant 0 : index
    %c0_20 = arith.constant 0 : index
    %c0_21 = arith.constant 0 : index
    %c0_22 = arith.constant 0 : index
    %22 = vector.load %arg10[%c0_19, %c0_20, %c0_21, %c0_22] : memref<1x4x32x8xbf16, #tpu.memory_space<vmem>>, vector<1x4x32x8xbf16>
    %23 = vector.shape_cast %22 : vector<1x4x32x8xbf16> to vector<4x32x8xbf16>
    %cst_23 = arith.constant dense<0.000000e+00> : vector<4x8x8xf32>
    %24 = tpu.matmul %7, %23, %cst_23 {dimension_numbers = #tpu.dot_dimension_numbers<[2], [1], [1], [2], [0, 0, 0, 1, 1, 2], [0], [0]>} : vector<4x8x32xbf16>, vector<4x32x8xbf16>, vector<4x8x8xf32> -> vector<4x8x8xf32>
    %c0_24 = arith.constant 0 : index
    %c0_25 = arith.constant 0 : index
    %c0_26 = arith.constant 0 : index
    %c0_27 = arith.constant 0 : index
    %25 = vector.load %arg11[%c0_24, %c0_25, %c0_26, %c0_27] : memref<1x4x1x8xf32, #tpu.memory_space<vmem>>, vector<1x4x1x8xf32>
    %26 = vector.shape_cast %25 : vector<1x4x1x8xf32> to vector<4x1x8xf32>
    %27 = vector.broadcast %26 : vector<4x1x8xf32> to vector<4x8x8xf32>
    %28 = arith.addf %24, %27 : vector<4x8x8xf32>
    %29 = arith.truncf %14 : vector<4x8x8xf32> to vector<4x8x8xbf16>
    %30 = arith.truncf %21 : vector<4x8x8xf32> to vector<4x8x8xbf16>
    %cst_28 = arith.constant dense<0.000000e+00> : vector<4x8x8xf32>
    %31 = tpu.matmul %29, %30, %cst_28 {dimension_numbers = #tpu.dot_dimension_numbers<[2], [2], [1], [1], [0, 0, 0, 1, 1, 1], [0], [0]>} : vector<4x8x8xbf16>, vector<4x8x8xbf16>, vector<4x8x8xf32> -> vector<4x8x8xf32>
    %cst_29 = arith.constant 0.353553385 : f32
    %32 = vector.broadcast %cst_29 : f32 to vector<4x8x8xf32>
    %33 = arith.mulf %31, %32 : vector<4x8x8xf32>
    %c0_30 = arith.constant 0 : index
    %c0_31 = arith.constant 0 : index
    %c0_32 = arith.constant 0 : index
    %34 = vector.load %arg3[%c0_30, %c0_31, %c0_32] : memref<1x8x8xf32, #tpu.memory_space<vmem>>, vector<1x8x8xf32>
    %35 = vector.shape_cast %34 : vector<1x8x8xf32> to vector<8x8xf32>
    %36 = vector.shape_cast %35 : vector<8x8xf32> to vector<1x8x8xf32>
    %37 = vector.broadcast %36 : vector<1x8x8xf32> to vector<4x8x8xf32>
    %38 = arith.addf %33, %37 : vector<4x8x8xf32>
    %cst_33 = arith.constant dense<0xFF800000> : vector<4x8xf32>
    %39 = vector.multi_reduction <maximumf>, %38, %cst_33 [2] : vector<4x8x8xf32> to vector<4x8xf32>
    %40 = vector.shape_cast %39 : vector<4x8xf32> to vector<4x8x1xf32>
    %41 = vector.broadcast %40 : vector<4x8x1xf32> to vector<4x8x8xf32>
    %42 = arith.subf %38, %41 : vector<4x8x8xf32>
    %43 = math.exp %42 : vector<4x8x8xf32>
    %cst_34 = arith.constant dense<0.000000e+00> : vector<4x8xf32>
    %44 = vector.multi_reduction <add>, %43, %cst_34 [2] : vector<4x8x8xf32> to vector<4x8xf32>
    %45 = vector.shape_cast %44 : vector<4x8xf32> to vector<4x8x1xf32>
    %46 = tpu.reciprocal %45 {approx = true} : vector<4x8x1xf32> -> vector<4x8x1xf32>
    %47 = vector.broadcast %46 : vector<4x8x1xf32> to vector<4x8x8xf32>
    %48 = arith.mulf %43, %47 : vector<4x8x8xf32>
    %49 = arith.truncf %48 : vector<4x8x8xf32> to vector<4x8x8xbf16>
    %50 = arith.truncf %28 : vector<4x8x8xf32> to vector<4x8x8xbf16>
    %cst_35 = arith.constant dense<0.000000e+00> : vector<4x8x8xf32>
    %51 = tpu.matmul %49, %50, %cst_35 {dimension_numbers = #tpu.dot_dimension_numbers<[2], [1], [1], [2], [0, 0, 0, 1, 1, 2], [0], [0]>} : vector<4x8x8xbf16>, vector<4x8x8xbf16>, vector<4x8x8xf32> -> vector<4x8x8xf32>
    %c0_36 = arith.constant 0 : index
    %c0_37 = arith.constant 0 : index
    %c0_38 = arith.constant 0 : index
    %c0_39 = arith.constant 0 : index
    %52 = vector.load %arg12[%c0_36, %c0_37, %c0_38, %c0_39] : memref<1x4x8x32xbf16, #tpu.memory_space<vmem>>, vector<1x4x8x32xbf16>
    %53 = vector.shape_cast %52 : vector<1x4x8x32xbf16> to vector<4x8x32xbf16>
    %54 = arith.truncf %51 : vector<4x8x8xf32> to vector<4x8x8xbf16>
    %cst_40 = arith.constant dense<0.000000e+00> : vector<4x8x32xf32>
    %55 = tpu.matmul %54, %53, %cst_40 {dimension_numbers = #tpu.dot_dimension_numbers<[2], [1], [1], [2], [0, 0, 0, 1, 1, 2], [0], [0]>} : vector<4x8x8xbf16>, vector<4x8x32xbf16>, vector<4x8x32xf32> -> vector<4x8x32xf32>
    %cst_41 = arith.constant dense<0.000000e+00> : vector<8x32xf32>
    %56 = vector.multi_reduction <add>, %55, %cst_41 [0] : vector<4x8x32xf32> to vector<8x32xf32>
    %c0_42 = arith.constant 0 : index
    %c0_43 = arith.constant 0 : index
    %c0_44 = arith.constant 0 : index
    %57 = vector.load %arg13[%c0_42, %c0_43, %c0_44] : memref<1x1x32xf32, #tpu.memory_space<vmem>>, vector<1x1x32xf32>
    %58 = vector.shape_cast %57 : vector<1x1x32xf32> to vector<1x32xf32>
    %59 = vector.broadcast %58 : vector<1x32xf32> to vector<8x32xf32>
    %60 = arith.addf %56, %59 : vector<8x32xf32>
    %61 = arith.addf %60, %3 : vector<8x32xf32>
    %c0_45 = arith.constant 0 : index
    %c0_46 = arith.constant 0 : index
    %c0_47 = arith.constant 0 : index
    %62 = vector.load %arg14[%c0_45, %c0_46, %c0_47] : memref<1x1x32xf32, #tpu.memory_space<vmem>>, vector<1x1x32xf32>
    %63 = vector.shape_cast %62 : vector<1x1x32xf32> to vector<1x32xf32>
    %c0_48 = arith.constant 0 : index
    %c0_49 = arith.constant 0 : index
    %c0_50 = arith.constant 0 : index
    %64 = vector.load %arg15[%c0_48, %c0_49, %c0_50] : memref<1x1x32xf32, #tpu.memory_space<vmem>>, vector<1x1x32xf32>
    %65 = vector.shape_cast %64 : vector<1x1x32xf32> to vector<1x32xf32>
    %cst_51 = arith.constant dense<0.000000e+00> : vector<8xf32>
    %66 = vector.multi_reduction <add>, %61, %cst_51 [1] : vector<8x32xf32> to vector<8xf32>
    %67 = vector.shape_cast %66 : vector<8xf32> to vector<8x1xf32>
    %cst_52 = arith.constant 3.200000e+01 : f32
    %68 = vector.broadcast %cst_52 : f32 to vector<8x1xf32>
    %69 = arith.divf %67, %68 : vector<8x1xf32>
    %70 = vector.broadcast %69 : vector<8x1xf32> to vector<8x32xf32>
    %71 = arith.subf %61, %70 : vector<8x32xf32>
    %72 = arith.mulf %71, %71 : vector<8x32xf32>
    %cst_53 = arith.constant dense<0.000000e+00> : vector<8xf32>
    %73 = vector.multi_reduction <add>, %72, %cst_53 [1] : vector<8x32xf32> to vector<8xf32>
    %74 = vector.shape_cast %73 : vector<8xf32> to vector<8x1xf32>
    %cst_54 = arith.constant 3.200000e+01 : f32
    %75 = vector.broadcast %cst_54 : f32 to vector<8x1xf32>
    %76 = arith.divf %74, %75 : vector<8x1xf32>
    %77 = vector.broadcast %69 : vector<8x1xf32> to vector<8x32xf32>
    %78 = arith.subf %61, %77 : vector<8x32xf32>
    %cst_55 = arith.constant 9.99999996E-13 : f32
    %79 = vector.broadcast %cst_55 : f32 to vector<8x1xf32>
    %80 = arith.addf %76, %79 : vector<8x1xf32>
    %81 = math.rsqrt %80 : vector<8x1xf32>
    %82 = vector.broadcast %81 : vector<8x1xf32> to vector<8x32xf32>
    %83 = arith.mulf %78, %82 : vector<8x32xf32>
    %84 = vector.broadcast %63 : vector<1x32xf32> to vector<8x32xf32>
    %85 = arith.mulf %83, %84 : vector<8x32xf32>
    %86 = vector.broadcast %65 : vector<1x32xf32> to vector<8x32xf32>
    %87 = arith.addf %85, %86 : vector<8x32xf32>
    %c0_56 = arith.constant 0 : index
    %c0_57 = arith.constant 0 : index
    %c0_58 = arith.constant 0 : index
    %88 = vector.load %arg16[%c0_56, %c0_57, %c0_58] : memref<1x32x64xbf16, #tpu.memory_space<vmem>>, vector<1x32x64xbf16>
    %89 = vector.shape_cast %88 : vector<1x32x64xbf16> to vector<32x64xbf16>
    %90 = arith.truncf %87 : vector<8x32xf32> to vector<8x32xbf16>
    %cst_59 = arith.constant dense<0.000000e+00> : vector<8x64xf32>
    %91 = tpu.matmul %90, %89, %cst_59 {dimension_numbers = #tpu.dot_dimension_numbers<[1], [0], [0], [1], [0, 0, 1, 1], [], []>} : vector<8x32xbf16>, vector<32x64xbf16>, vector<8x64xf32> -> vector<8x64xf32>
    %c0_60 = arith.constant 0 : index
    %c0_61 = arith.constant 0 : index
    %c0_62 = arith.constant 0 : index
    %92 = vector.load %arg17[%c0_60, %c0_61, %c0_62] : memref<1x1x64xf32, #tpu.memory_space<vmem>>, vector<1x1x64xf32>
    %93 = vector.shape_cast %92 : vector<1x1x64xf32> to vector<1x64xf32>
    %94 = vector.broadcast %93 : vector<1x64xf32> to vector<8x64xf32>
    %95 = arith.addf %91, %94 : vector<8x64xf32>
    %96 = arith.mulf %95, %95 : vector<8x64xf32>
    %97 = arith.mulf %95, %96 : vector<8x64xf32>
    %cst_63 = arith.constant 4.471500e-02 : f32
    %98 = vector.broadcast %cst_63 : f32 to vector<8x64xf32>
    %99 = arith.mulf %98, %97 : vector<8x64xf32>
    %100 = arith.addf %95, %99 : vector<8x64xf32>
    %cst_64 = arith.constant 0.797884583 : f32
    %101 = vector.broadcast %cst_64 : f32 to vector<8x64xf32>
    %102 = arith.mulf %101, %100 : vector<8x64xf32>
    %103 = math.tanh %102 : vector<8x64xf32>
    %cst_65 = arith.constant 1.000000e+00 : f32
    %104 = vector.broadcast %cst_65 : f32 to vector<8x64xf32>
    %105 = arith.addf %104, %103 : vector<8x64xf32>
    %cst_66 = arith.constant 5.000000e-01 : f32
    %106 = vector.broadcast %cst_66 : f32 to vector<8x64xf32>
    %107 = arith.mulf %106, %105 : vector<8x64xf32>
    %108 = arith.mulf %95, %107 : vector<8x64xf32>
    %c0_67 = arith.constant 0 : index
    %c0_68 = arith.constant 0 : index
    %c0_69 = arith.constant 0 : index
    %109 = vector.load %arg18[%c0_67, %c0_68, %c0_69] : memref<1x64x32xbf16, #tpu.memory_space<vmem>>, vector<1x64x32xbf16>
    %110 = vector.shape_cast %109 : vector<1x64x32xbf16> to vector<64x32xbf16>
    %111 = arith.truncf %108 : vector<8x64xf32> to vector<8x64xbf16>
    %cst_70 = arith.constant dense<0.000000e+00> : vector<8x32xf32>
    %112 = tpu.matmul %111, %110, %cst_70 {dimension_numbers = #tpu.dot_dimension_numbers<[1], [0], [0], [1], [0, 0, 1, 1], [], []>} : vector<8x64xbf16>, vector<64x32xbf16>, vector<8x32xf32> -> vector<8x32xf32>
    %c0_71 = arith.constant 0 : index
    %c0_72 = arith.constant 0 : index
    %c0_73 = arith.constant 0 : index
    %113 = vector.load %arg19[%c0_71, %c0_72, %c0_73] : memref<1x1x32xf32, #tpu.memory_space<vmem>>, vector<1x1x32xf32>
    %114 = vector.shape_cast %113 : vector<1x1x32xf32> to vector<1x32xf32>
    %115 = vector.broadcast %114 : vector<1x32xf32> to vector<8x32xf32>
    %116 = arith.addf %112, %115 : vector<8x32xf32>
    %117 = arith.addf %116, %87 : vector<8x32xf32>
    %c0_74 = arith.constant 0 : index
    %c0_75 = arith.constant 0 : index
    %c0_76 = arith.constant 0 : index
    %118 = vector.load %arg20[%c0_74, %c0_75, %c0_76] : memref<1x1x32xf32, #tpu.memory_space<vmem>>, vector<1x1x32xf32>
    %119 = vector.shape_cast %118 : vector<1x1x32xf32> to vector<1x32xf32>
    %c0_77 = arith.constant 0 : index
    %c0_78 = arith.constant 0 : index
    %c0_79 = arith.constant 0 : index
    %120 = vector.load %arg21[%c0_77, %c0_78, %c0_79] : memref<1x1x32xf32, #tpu.memory_space<vmem>>, vector<1x1x32xf32>
    %121 = vector.shape_cast %120 : vector<1x1x32xf32> to vector<1x32xf32>
    %cst_80 = arith.constant dense<0.000000e+00> : vector<8xf32>
    %122 = vector.multi_reduction <add>, %117, %cst_80 [1] : vector<8x32xf32> to vector<8xf32>
    %123 = vector.shape_cast %122 : vector<8xf32> to vector<8x1xf32>
    %cst_81 = arith.constant 3.200000e+01 : f32
    %124 = vector.broadcast %cst_81 : f32 to vector<8x1xf32>
    %125 = arith.divf %123, %124 : vector<8x1xf32>
    %126 = vector.broadcast %125 : vector<8x1xf32> to vector<8x32xf32>
    %127 = arith.subf %117, %126 : vector<8x32xf32>
    %128 = arith.mulf %127, %127 : vector<8x32xf32>
    %cst_82 = arith.constant dense<0.000000e+00> : vector<8xf32>
    %129 = vector.multi_reduction <add>, %128, %cst_82 [1] : vector<8x32xf32> to vector<8xf32>
    %130 = vector.shape_cast %129 : vector<8xf32> to vector<8x1xf32>
    %cst_83 = arith.constant 3.200000e+01 : f32
    %131 = vector.broadcast %cst_83 : f32 to vector<8x1xf32>
    %132 = arith.divf %130, %131 : vector<8x1xf32>
    %133 = vector.broadcast %125 : vector<8x1xf32> to vector<8x32xf32>
    %134 = arith.subf %117, %133 : vector<8x32xf32>
    %cst_84 = arith.constant 9.99999996E-13 : f32
    %135 = vector.broadcast %cst_84 : f32 to vector<8x1xf32>
    %136 = arith.addf %132, %135 : vector<8x1xf32>
    %137 = math.rsqrt %136 : vector<8x1xf32>
    %138 = vector.broadcast %137 : vector<8x1xf32> to vector<8x32xf32>
    %139 = arith.mulf %134, %138 : vector<8x32xf32>
    %140 = vector.broadcast %119 : vector<1x32xf32> to vector<8x32xf32>
    %141 = arith.mulf %139, %140 : vector<8x32xf32>
    %142 = vector.broadcast %121 : vector<1x32xf32> to vector<8x32xf32>
    %143 = arith.addf %141, %142 : vector<8x32xf32>
    %c0_85 = arith.constant 0 : index
    %c0_86 = arith.constant 0 : index
    %144 = vector.load %arg27[%c0_85, %c0_86] : memref<8x32xf32, #tpu.memory_space<vmem>>, vector<8x32xf32>
    tpu.vector_store %arg27[%c0_85, %c0_86], %143 {strides = array<i32>} : memref<8x32xf32, #tpu.memory_space<vmem>>, vector<8x32xf32>,
    %c1_i32 = arith.constant 1 : i32
    %145 = arith.cmpi eq, %arg1, %c1_i32 : i32
    %146 = arith.extui %145 : i1 to i32
    %c0_i32_87 = arith.constant 0 : i32
    %147 = arith.cmpi ne, %146, %c0_i32_87 : i32
    scf.if %147 {
      %148 = vector.extract_strided_slice %143 {offsets = [0, 0], sizes = [1, 32], strides = [1, 1]} : vector<8x32xf32> to vector<1x32xf32>
      %c0_88 = arith.constant 0 : index
      %c0_89 = arith.constant 0 : index
      %149 = vector.load %arg22[%c0_88, %c0_89] : memref<32x32xbf16, #tpu.memory_space<vmem>>, vector<32x32xbf16>
      %150 = arith.truncf %148 : vector<1x32xf32> to vector<1x32xbf16>
      %cst_90 = arith.constant dense<0.000000e+00> : vector<1x32xf32>
      %151 = tpu.matmul %150, %149, %cst_90 {dimension_numbers = #tpu.dot_dimension_numbers<[1], [0], [0], [1], [0, 0, 1, 1], [], []>} : vector<1x32xbf16>, vector<32x32xbf16>, vector<1x32xf32> -> vector<1x32xf32>
      %c0_91 = arith.constant 0 : index
      %c0_92 = arith.constant 0 : index
      %152 = vector.load %arg23[%c0_91, %c0_92] : memref<1x32xf32, #tpu.memory_space<vmem>>, vector<1x32xf32>
      %153 = arith.addf %151, %152 : vector<1x32xf32>
      %154 = math.tanh %153 : vector<1x32xf32>
      %c0_93 = arith.constant 0 : index
      %c0_94 = arith.constant 0 : index
      %155 = vector.load %arg24[%c0_93, %c0_94] : memref<32x128xbf16, #tpu.memory_space<vmem>>, vector<32x128xbf16>
      %156 = arith.truncf %154 : vector<1x32xf32> to vector<1x32xbf16>
      %cst_95 = arith.constant dense<0.000000e+00> : vector<1x128xf32>
      %157 = tpu.matmul %156, %155, %cst_95 {dimension_numbers = #tpu.dot_dimension_numbers<[1], [0], [0], [1], [0, 0, 1, 1], [], []>} : vector<1x32xbf16>, vector<32x128xbf16>, vector<1x128xf32> -> vector<1x128xf32>
      %c0_96 = arith.constant 0 : index
      %c0_97 = arith.constant 0 : index
      %158 = vector.load %arg25[%c0_96, %c0_97] : memref<1x128xf32, #tpu.memory_space<vmem>>, vector<1x128xf32>
      %159 = arith.addf %157, %158 : vector<1x128xf32>
      %160 = vector.shape_cast %159 : vector<1x128xf32> to vector<1x1x128xf32>
      %c0_98 = arith.constant 0 : index
      %c0_99 = arith.constant 0 : index
      %c0_100 = arith.constant 0 : index
      %161 = vector.load %arg26[%c0_98, %c0_99, %c0_100] : memref<1x1x128xf32, #tpu.memory_space<vmem>>, vector<1x1x128xf32>
      tpu.vector_store %arg26[%c0_98, %c0_99, %c0_100], %160 {strides = array<i32>} : memref<1x1x128xf32, #tpu.memory_space<vmem>>, vector<1x1x128xf32>,
    } else {
    }
    return
  }
  func.func @transform_0(%arg0: i32, %arg1: i32) -> (i32, i32, i32) {
    %c0_i32 = arith.constant 0 : i32
    %c0_i32_0 = arith.constant 0 : i32
    %c0_i32_1 = arith.constant 0 : i32
    return %arg0, %c0_i32, %c0_i32_0 : i32, i32, i32
  }
  func.func @transform_1(%arg0: i32, %arg1: i32) -> (i32, i32, i32) {
    %c0_i32 = arith.constant 0 : i32
    %c0_i32_0 = arith.constant 0 : i32
    %c0_i32_1 = arith.constant 0 : i32
    return %arg0, %c0_i32, %c0_i32_0 : i32, i32, i32
  }
  func.func @transform_2(%arg0: i32, %arg1: i32) -> (i32, i32) {
    %c0_i32 = arith.constant 0 : i32
    %c0_i32_0 = arith.constant 0 : i32
    %c0_i32_1 = arith.constant 0 : i32
    return %c0_i32, %c0_i32_0 : i32, i32
  }
  func.func @transform_3(%arg0: i32, %arg1: i32) -> (i32, i32) {
    %c0_i32 = arith.constant 0 : i32
    %c0_i32_0 = arith.constant 0 : i32
    %c0_i32_1 = arith.constant 0 : i32
    return %c0_i32, %c0_i32_0 : i32, i32
  }
  func.func @transform_4(%arg0: i32, %arg1: i32) -> (i32, i32, i32, i32) {
    %c0_i32 = arith.constant 0 : i32
    %c0_i32_0 = arith.constant 0 : i32
    %c0_i32_1 = arith.constant 0 : i32
    %c0_i32_2 = arith.constant 0 : i32
    return %arg1, %c0_i32, %c0_i32_0, %c0_i32_1 : i32, i32, i32, i32
  }
  func.func @transform_5(%arg0: i32, %arg1: i32) -> (i32, i32, i32, i32) {
    %c0_i32 = arith.constant 0 : i32
    %c0_i32_0 = arith.constant 0 : i32
    %c0_i32_1 = arith.constant 0 : i32
    %c0_i32_2 = arith.constant 0 : i32
    return %arg1, %c0_i32, %c0_i32_0, %c0_i32_1 : i32, i32, i32, i32
  }
  func.func @transform_6(%arg0: i32, %arg1: i32) -> (i32, i32, i32, i32) {
    %c0_i32 = arith.constant 0 : i32
    %c0_i32_0 = arith.constant 0 : i32
    %c0_i32_1 = arith.constant 0 : i32
    %c0_i32_2 = arith.constant 0 : i32
    return %arg1, %c0_i32, %c0_i32_0, %c0_i32_1 : i32, i32, i32, i32
  }
  func.func @transform_7(%arg0: i32, %arg1: i32) -> (i32, i32, i32, i32) {
    %c0_i32 = arith.constant 0 : i32
    %c0_i32_0 = arith.constant 0 : i32
    %c0_i32_1 = arith.constant 0 : i32
    %c0_i32_2 = arith.constant 0 : i32
    return %arg1, %c0_i32, %c0_i32_0, %c0_i32_1 : i32, i32, i32, i32
  }
  func.func @transform_8(%arg0: i32, %arg1: i32) -> (i32, i32, i32, i32) {
    %c0_i32 = arith.constant 0 : i32
    %c0_i32_0 = arith.constant 0 : i32
    %c0_i32_1 = arith.constant 0 : i32
    %c0_i32_2 = arith.constant 0 : i32
    return %arg1, %c0_i32, %c0_i32_0, %c0_i32_1 : i32, i32, i32, i32
  }
  func.func @transform_9(%arg0: i32, %arg1: i32) -> (i32, i32, i32, i32) {
    %c0_i32 = arith.constant 0 : i32
    %c0_i32_0 = arith.constant 0 : i32
    %c0_i32_1 = arith.constant 0 : i32
    %c0_i32_2 = arith.constant 0 : i32
    return %arg1, %c0_i32, %c0_i32_0, %c0_i32_1 : i32, i32, i32, i32
  }
  func.func @transform_10(%arg0: i32, %arg1: i32) -> (i32, i32, i32, i32) {
    %c0_i32 = arith.constant 0 : i32
    %c0_i32_0 = arith.constant 0 : i32
    %c0_i32_1 = arith.constant 0 : i32
    %c0_i32_2 = arith.constant 0 : i32
    return %arg1, %c0_i32, %c0_i32_0, %c0_i32_1 : i32, i32, i32, i32
  }
  func.func @transform_11(%arg0: i32, %arg1: i32) -> (i32, i32, i32) {
    %c0_i32 = arith.constant 0 : i32
    %c0_i32_0 = arith.constant 0 : i32
    %c0_i32_1 = arith.constant 0 : i32
    return %arg1, %c0_i32, %c0_i32_0 : i32, i32, i32
  }
  func.func @transform_12(%arg0: i32, %arg1: i32) -> (i32, i32, i32) {
    %c0_i32 = arith.constant 0 : i32
    %c0_i32_0 = arith.constant 0 : i32
    %c0_i32_1 = arith.constant 0 : i32
    return %arg1, %c0_i32, %c0_i32_0 : i32, i32, i32
  }
  func.func @transform_13(%arg0: i32, %arg1: i32) -> (i32, i32, i32) {
    %c0_i32 = arith.constant 0 : i32
    %c0_i32_0 = arith.constant 0 : i32
    %c0_i32_1 = arith.constant 0 : i32
    return %arg1, %c0_i32, %c0_i32_0 : i32, i32, i32
  }
  func.func @transform_14(%arg0: i32, %arg1: i32) -> (i32, i32, i32) {
    %c0_i32 = arith.constant 0 : i32
    %c0_i32_0 = arith.constant 0 : i32
    %c0_i32_1 = arith.constant 0 : i32
    return %arg1, %c0_i32, %c0_i32_0 : i32, i32, i32
  }
  func.func @transform_15(%arg0: i32, %arg1: i32) -> (i32, i32, i32) {
    %c0_i32 = arith.constant 0 : i32
    %c0_i32_0 = arith.constant 0 : i32
    %c0_i32_1 = arith.constant 0 : i32
    return %arg1, %c0_i32, %c0_i32_0 : i32, i32, i32
  }
  func.func @transform_16(%arg0: i32, %arg1: i32) -> (i32, i32, i32) {
    %c0_i32 = arith.constant 0 : i32
    %c0_i32_0 = arith.constant 0 : i32
    %c0_i32_1 = arith.constant 0 : i32
    return %arg1, %c0_i32, %c0_i32_0 : i32, i32, i32
  }
  func.func @transform_17(%arg0: i32, %arg1: i32) -> (i32, i32, i32) {
    %c0_i32 = arith.constant 0 : i32
    %c0_i32_0 = arith.constant 0 : i32
    %c0_i32_1 = arith.constant 0 : i32
    return %arg1, %c0_i32, %c0_i32_0 : i32, i32, i32
  }
  func.func @transform_18(%arg0: i32, %arg1: i32) -> (i32, i32, i32) {
    %c0_i32 = arith.constant 0 : i32
    %c0_i32_0 = arith.constant 0 : i32
    %c0_i32_1 = arith.constant 0 : i32
    return %arg1, %c0_i32, %c0_i32_0 : i32, i32, i32
  }
  func.func @transform_19(%arg0: i32, %arg1: i32) -> (i32, i32, i32) {
    %c0_i32 = arith.constant 0 : i32
    %c0_i32_0 = arith.constant 0 : i32
    %c0_i32_1 = arith.constant 0 : i32
    return %arg1, %c0_i32, %c0_i32_0 : i32, i32, i32
  }
  func.func @transform_20(%arg0: i32, %arg1: i32) -> (i32, i32) {
    %c0_i32 = arith.constant 0 : i32
    %c0_i32_0 = arith.constant 0 : i32
    %c0_i32_1 = arith.constant 0 : i32
    return %c0_i32, %c0_i32_0 : i32, i32
  }
  func.func @transform_21(%arg0: i32, %arg1: i32) -> (i32, i32) {
    %c0_i32 = arith.constant 0 : i32
    %c0_i32_0 = arith.constant 0 : i32
    %c0_i32_1 = arith.constant 0 : i32
    return %c0_i32, %c0_i32_0 : i32, i32
  }
  func.func @transform_22(%arg0: i32, %arg1: i32) -> (i32, i32) {
    %c0_i32 = arith.constant 0 : i32
    %c0_i32_0 = arith.constant 0 : i32
    %c0_i32_1 = arith.constant 0 : i32
    return %c0_i32, %c0_i32_0 : i32, i32
  }
  func.func @transform_23(%arg0: i32, %arg1: i32) -> (i32, i32) {
    %c0_i32 = arith.constant 0 : i32
    %c0_i32_0 = arith.constant 0 : i32
    %c0_i32_1 = arith.constant 0 : i32
    return %c0_i32, %c0_i32_0 : i32, i32
  }
  func.func @transform_24(%arg0: i32, %arg1: i32) -> (i32, i32, i32) {
    %c0_i32 = arith.constant 0 : i32
    %c0_i32_0 = arith.constant 0 : i32
    %c0_i32_1 = arith.constant 0 : i32
    return %arg0, %c0_i32, %c0_i32_0 : i32, i32, i32
  }
}

</mosaic_0001>

<bundles_post_ra>
// kernel: tpu_custom_call.1
= control target key start
LH: loop header
LB: loop body
LE: loop exit
PB: predicated region body
PF: predicated region fallthrough
CT: control target
= control target key end

     0   :  { %s4349_s0 = inlined_call_operand.vmem [shape: f32[2,8,32], index: 0, kind: input, shape index: {}]   ;;  %s4350_s1 = inlined_call_operand.vmem [shape: f32[2,8,8], index: 1, kind: input, shape index: {}]   ;;  %s4351_s2 = inlined_call_operand.vmem [shape: f32[1,32], index: 2, kind: input, shape index: {}]   ;;  %s4352_s3 = inlined_call_operand.vmem [shape: f32[1,32], index: 3, kind: input, shape index: {}]   ;;  %s4353_s4 = inlined_call_operand.vmem [shape: bf16[2,4,32,8], index: 4, kind: input, shape index: {}]   ;;  %s4354_s5 = inlined_call_operand.vmem [shape: f32[2,4,1,8], index: 5, kind: input, shape index: {}]   ;;  %s4355_s6 = inlined_call_operand.vmem [shape: bf16[2,4,32,8], index: 6, kind: input, shape index: {}]   ;;  %s4356_s7 = inlined_call_operand.vmem [shape: f32[2,4,1,8], index: 7, kind: input, shape index: {}]   ;;  %s4357_s8 = inlined_call_operand.vmem [shape: bf16[2,4,32,8], index: 8, kind: input, shape index: {}]   ;;  %s4358_s9 = inlined_call_operand.vmem [shape: f32[2,4,1,8], index: 9, kind: input, shape index: {}]   ;;  %s4359_s10 = inlined_call_operand.vmem [shape: bf16[2,4,8,32], index: 10, kind: input, shape index: {}]   ;;  %s4360_s11 = inlined_call_operand.vmem [shape: f32[2,1,32], index: 11, kind: input, shape index: {}]   ;;  %s4361_s12 = inlined_call_operand.vmem [shape: f32[2,1,32], index: 12, kind: input, shape index: {}]   ;;  %s4362_s13 = inlined_call_operand.vmem [shape: f32[2,1,32], index: 13, kind: input, shape index: {}]   ;;  %s4363_s14 = inlined_call_operand.vmem [shape: bf16[2,32,64], index: 14, kind: input, shape index: {}]   ;;  %s4364_s15 = inlined_call_operand.vmem [shape: f32[2,1,64], index: 15, kind: input, shape index: {}]   ;;  %s4365_s16 = inlined_call_operand.vmem [shape: bf16[2,64,32], index: 16, kind: input, shape index: {}]   ;;  %s4366_s17 = inlined_call_operand.vmem [shape: f32[2,1,32], index: 17, kind: input, shape index: {}]   ;;  %s4367_s18 = inlined_call_operand.vmem [shape: f32[2,1,32], index: 18, kind: input, shape index: {}]   ;;  %s4368_s19 = inlined_call_operand.vmem [shape: f32[2,1,32], index: 19, kind: input, shape index: {}]   ;;  %s4369_s20 = inlined_call_operand.vmem [shape: bf16[32,32], index: 20, kind: input, shape index: {}]   ;;  %s4370_s21 = inlined_call_operand.vmem [shape: f32[1,32], index: 21, kind: input, shape index: {}]   ;;  %s4371_s22 = inlined_call_operand.vmem [shape: bf16[32,128], index: 22, kind: input, shape index: {}]   ;;  %s4372_s23 = inlined_call_operand.vmem [shape: f32[1,128], index: 23, kind: input, shape index: {}]   ;;  %s4373_s24 = inlined_call_operand.hbm [shape: f32[2,1,128], index: 24, kind: output, shape index: {}]  }
   0x1   :  { %4393 = sst [smem:[#allocation23_spill]] %s4349_s0 }
   0x2   :  { %4394 = sst [smem:[#allocation24_spill]] %s4350_s1 }
   0x3   :  { %4395 = sst [smem:[#allocation25_spill]] %s4351_s2 }
   0x4   :  { %4396 = sst [smem:[#allocation26_spill]] %s4352_s3 }
   0x5   :  { %4397 = sst [smem:[#allocation27_spill]] %s4353_s4 }
   0x6   :  { %4398 = sst [smem:[#allocation28_spill]] %s4354_s5 }
   0x7   :  { %4399 = sst [smem:[#allocation29_spill]] %s4355_s6 }
   0x8   :  { %4400 = sst [smem:[#allocation30_spill]] %s4356_s7 }
   0x9   :  { %4401 = sst [smem:[#allocation31_spill]] %s4357_s8 }
   0xa   :  { %4402 = sst [smem:[#allocation32_spill]] %s4358_s9 }
   0xb   :  { %4403 = sst [smem:[#allocation33_spill]] %s4359_s10 }
   0xc   :  { %4404 = sst [smem:[#allocation34_spill]] %s4363_s14 }
   0xd   :  { %4405 = sst [smem:[#allocation35_spill]] %s4368_s19 }
   0xe   :  { %4406 = sst [smem:[#allocation36_spill]] %s4369_s20 }
   0xf   :  { %4407 = sst [smem:[#allocation37_spill]] %s4370_s21 }
  0x10   :  { %4408 = sst [smem:[#allocation38_spill]] %s4371_s22 }
  0x11   :  { %4409 = sst [smem:[#allocation39_spill]] %s4372_s23 }
  0x12   :  { %4410 = sst [smem:[#allocation40_spill]] %s4373_s24 }
  0x13   :  { %29 = vsyncpa [#allocation4], 0 }
  0x14   :  { %31 = vsyncpa [#allocation4 + $0x1], 0  ;;  %s3843_s5 = smov 0   ;;  %s3845_s26 = smov 0  }
  0x15   :  { %s3847_s27 = smov 0   ;;  %s3849_s28 = smov 0  }
  0x16   :  { %s3851_s6 = smov 0   ;;  %s3853_s2 = smov 0  }
  0x17   :  { %s3855_s29 = smov 0   ;;  %s3857_s0 = smov 0  }
  0x18 LB: > { %4411 = sst [smem:[#allocation6_spill]] %s3683_s5  ;;  %s3088_s7 = sadd.s32 4294967295, %s3711_s0   ;;  %s3711_s0 = sphi %s3857_s0, %s37_s0   ;;  %s3707_s29 = sphi %s3855_s29, %s4477_s29   ;;  %s3703_s2 = sphi %s3853_s2, %s4472_s2   ;;  %s3699_s6 = sphi %s3851_s6, %s4471_s6   ;;  %s3695_s28 = sphi %s3849_s28, %s4470_s28   ;;  %s3691_s27 = sphi %s3847_s27, %s4476_s27   ;;  %s3687_s26 = sphi %s3845_s26, %s4475_s26   ;;  %s3683_s5 = sphi %s3843_s5, %s4474_s5  }
  0x19   : > { %4412 = sst [smem:[#allocation7_spill]] %s3691_s27  ;;  %s3089_s30 = sadd.s32 4294967294, %s3711_s0  }
  0x1a   : > { %4413 = sst [smem:[#allocation8_spill]] %s3695_s28  ;;  %s46_s3 = sadd.s32 1, %s3703_s2 }
  0x1b   : > { %4414 = sst [smem:[#allocation9_spill]] %s3699_s6  ;;  %p47_p0 = scmp.ge.s32.totalorder %s46_s3, 2 }
  0x1c   : > { %4415 = sst [smem:[#allocation10_spill]] %s3703_s2  ;;  %s49_s25 = sadd.s32 1, %s3707_s29 }
  0x1d   : > { %4416 = sst [smem:[#allocation11_spill]] %s3707_s29  ;;  %p660_p1 = scmp.ne.s32.totalorder %s3691_s27, %s3687_s26 }
  0x1e   : > { %4417 = sst [smem:[#allocation12_spill]] %s3711_s0  ;;  %p661_p2 = scmp.eq.s32.totalorder %s3088_s7, 3 }
  0x1f   : > { %s4479_s3 = smov (%p47_p0, %s46_s3), 0  ;;  %s4481_s25 = smov (!%p47_p0, %s49_s25), %s3707_s29 }
  0x20   : > { %4418 = sst [smem:[#allocation13_spill]] %s4479_s3  ;;  %p3892_p3 = por %p661_p2, %p660_p1 }
  0x21   : > { %p666_p4 = scmp.ne.s32.totalorder %s3687_s26, %s3683_s5  ;;  %p51_p5 = scmp.ge.s32.totalorder %s4481_s25, 2 }
  0x22   : > { %s4419_s8 = scalar_select %p3892_p3, 1, 0 }
  0x23   : > { %p667_p6 = scmp.eq.s32.totalorder %s3089_s30, 3  ;;  %p3092_p7 = scmp.ge.s32.totalorder %s3711_s0, 1 }
  0x24   : > { %4420 = sst [smem:[#allocation14_spill]] %s4419_s8  ;;  %p828_p8 = scmp.lt.s32.totalorder %s3711_s0, 5 }
  0x25   : > { %s4483_s25 = smov (%p51_p5, %s4481_s25), 0  ;;  %p3902_p9 = por %p667_p6, %p666_p4 }
  0x26   : > { %4421 = sst [smem:[#allocation15_spill]] %s4483_s25  ;;  %p829_p10 = pnand %p3092_p7, %p828_p8 }
  0x27   : > { %s4422_s4 = scalar_select %p3902_p9, 1, 0 }
  0x28   : > { %s647_s1 = ssub.s32 %s3707_s29, %s4483_s25  ;;  %s650_s7 = sadd.s32 1, %s3691_s27 }
  0x29   : > { %4423 = sst [smem:[#allocation16_spill]] %s4422_s4  ;;  %p648_p11 = scmp.eq.s32.totalorder %s647_s1, 0 }
  0x2a   : > { %832 = sbr.rel (%p829_p10) target bundleno = 3180 (0xc6c), region = 116 }
  0x2b   : > { %s3910_s3 = scalar_select %p648_p11, %s3691_s27, %s650_s7  }
  0x2d   : > { %4424 = sst [smem:[#allocation17_spill]] %s3910_s3 }
  0x31   : > { %p959_p12 = scmp.lt.s32.totalorder %s3699_s6, 1  ;;  %p967_p13 = scmp.lt.s32.totalorder %s3695_s28, 1 }
  0x32   : > { %s4425_s29 = sld [smem:[#allocation23_spill]]  ;;  %s4426_s0 = sld [smem:[#allocation24_spill]] }
  0x33   : > { %s960_s2 = scalar_select %p959_p12, %s3699_s6, 1 }
  0x34   : > { %s3917_s5 = scalar_select %p967_p13, %s3695_s28, 1 }
  0x35   : > { %s3093_s1 = sshll.u32 %s960_s2, 3  ;;  %s4428_s21 = sld [smem:[#allocation27_spill]] }
  0x36   : > { %s3198_s24 = sshll.u32 %s3917_s5, 6  ;;  %s3097_s8 = sshll.u32 %s3917_s5, 2 }
  0x37   : > { %s4430_s28 = sld [smem:[#allocation28_spill]]  ;;  %s4432_s4 = sld [smem:[#allocation29_spill]] }
  0x38   : > { %s962_s3 = scalar_lea.vmem %s4425_s29, %s3093_s1  ;;  %s3925_s30 = scalar_lea.vmem %s4426_s0, %s3093_s1 }
  0x39   : > { %4427 = sst [smem:[#allocation18_spill]] %s3925_s30  ;;  %s4434_s30 = sld [smem:[#allocation30_spill]] }
  0x3a   : > { %s4437_s9 = sld [smem:[#allocation32_spill]]  ;;  %s3201_s25 = sshll.u32 %s3917_s5, 4 }
  0x3b   : > { %s3932_s22 = scalar_lea.vmem %s4428_s21, %s3198_s24  ;;  %s4438_s10 = sld [smem:[#allocation33_spill]] }
  0x3c   : > { %4429 = sst [smem:[#allocation19_spill]] %s3932_s22  ;;  %s4436_s22 = sld [smem:[#allocation31_spill]] }
  0x3d   : > { %s3937_s29 = scalar_lea.vmem %s4430_s28, %s3097_s8  ;;  %s3942_s0 = scalar_lea.vmem %s4432_s4, %s3198_s24 }
  0x3e   : > { %4431 = sst [smem:[#allocation20_spill]] %s3937_s29  ;;  %s4439_s14 = sld [smem:[#allocation34_spill]] }
  0x3f   : > { %4433 = sst [smem:[#allocation21_spill]] %s3942_s0  ;;  %s3947_s23 = scalar_lea.vmem %s4434_s30, %s3097_s8 }
  0x40   : > { %4435 = sst [smem:[#allocation22_spill]] %s3947_s23  ;;  %s3957_s2 = scalar_lea.vmem %s4437_s9, %s3097_s8 }
  0x41   : > { %s3967_s30 = scalar_lea.vmem %s4438_s10, %s3201_s25  ;;  %s3203_s0 = sshll.u32 %s3917_s5, 5 }
  0x42   : > { %s3952_s19 = scalar_lea.vmem %s4436_s22, %s3198_s24  ;;  %s3990_s10 = scalar_lea.vmem %s4365_s16, %s3203_s0 }
  0x43   : > { %s1023_s24 = scalar_lea.vmem %s4366_s17, %s3917_s5  ;;  %s1026_s8 = scalar_lea.vmem %s4367_s18, %s3917_s5 }
  0x44   : > { %s3980_s28 = scalar_lea.vmem %s4439_s14, %s3201_s25  ;;  %s4440_s22 = sld [smem:[#allocation35_spill]] }
  0x45   : > { %s4441_s27 = sand.u32 1, %s3687_s26   ;;  %s4442_s29 = sld [smem:[#allocation8_spill]] }
  0x46   : > { %s4006_s4 = scalar_lea.vmem [#allocation3], %s4441_s27 }
  0x4a   : > { %s1029_s14 = scalar_lea.vmem %s4440_s22, %s3917_s5 }
  0x4b   : > { %p3110_p0 = scmp.ne.s32.totalorder %s4442_s29, 0 }
  0x4c   : > { %v1035_v0 = vld [vmem:[%s962_s3] sm:$0xff] (!%p3110_p0)  ;;  %vm1038_vm0 = vcmask (!%p3110_p0), 261120   ;;  %s4443_s22 = sld [smem:[#allocation25_spill]] (!%p3110_p0)  ;;  %s4444_s0 = sld [smem:[#allocation26_spill]] (!%p3110_p0) }
  0x4d   : > { %1034 = sbr.rel (%p3110_p0) target bundleno = 391 (0x187), region = 120  ;;  %v1039_v1 = vsel (!%p3110_p0), %vm1038_vm0, %v1035_v0, 0.0 }
  0x4e   : > { %1040 = vadd.xlane.f32.xlu0 (!%p3110_p0), %v1039_v1 }
  0x52   : > { %v3111_v11 = vld [vmem:[%s4443_s22] ss:$0 sm:$0xff] (!%p3110_p0) }
  0x53   : > { %v3112_v13 = vld [vmem:[%s4444_s0] ss:$0 sm:$0xff] (!%p3110_p0) }
  0xdb   : > { %v1041_v2 = vpop.xlane.xlu0 %1040 }
  0xdc   : > { %v1043_v3 = vmul.f32 0.03125, %v1041_v2 }
  0xde   : > { %v1044_v4 = vsub.f32 %v1035_v0, %v1043_v3 }
  0xe0   : > { %v1045_v5 = vmul.f32 %v1044_v4, %v1044_v4 }
  0xe2   : > { %v1046_v6 = vsel %vm1038_vm0, %v1045_v5, 0.0 }
  0xe3   : > { %1047 = vadd.xlane.f32.xlu0 %v1046_v6 }
 0x170   : > { %v1048_v7 = vpop.xlane.xlu0 %1047 }
 0x171   : > { %v1049_v8 = vmul.f32 0.03125, %v1048_v7 }
 0x173   : > { %v1050_v9 = vadd.f32 1e-12, %v1049_v8 }
 0x175   : > { %3557 = vrsqrt.f32 %v1050_v9 }
 0x17f   : > { %v3558_v10 = vpop.eup %3557 }
 0x180   : > { %v1052_v12 = vmul.f32 %v3558_v10, %v1044_v4 }
 0x182   : > { %v1059_v14 = vmul.f32 %v3111_v11, %v1052_v12 }
 0x184   : > { %v1066_v15 = vadd.f32 %v3112_v13, %v1059_v14 }
 0x186   : > { %1067 = vst.msk [vmem:[#allocation2] sm:$0xff] %vm1038_vm0, %v1066_v15 }
 0x187 PF: > { %s4445_s1 = sld [smem:[#allocation19_spill]]  ;;  %v3713_v17 = vmov 0.0   ;;  %vm3714_vm1 = vmmov 0   ;;  %vm1126_vm2 = vcmask 261120   ;;  %s4446_s23 = sld [smem:[#allocation21_spill]]  ;;  %v3575_v35 = vld [vmem:[%s3952_s19] sm:$0xff]  }
 0x188   : > { %3278 = vmatprep.subr.bf16.mxu0 %v3713_v17  ;;  %3286 = vmatprep.subr.bf16.mxu1 %v3713_v17  ;;  %v3576_v36 = vld [vmem:[%s3952_s19 + $0x10] sm:$0xff]   ;;  %v3577_v37 = vld [vmem:[%s3952_s19 + $0x8] sm:$0xff]   ;;  %v3578_v38 = vld [vmem:[%s3952_s19 + $0x18] sm:$0xff]   ;;  %s4448_s7 = sld [smem:[#allocation20_spill]]  ;;  %vm1838_vm3 = vcmask 64512   ;;  %vm2087_vm4 = vcmask 1043456   ;;  %s4450_s25 = scalar_lea.vmem %s4360_s11, %s3917_s5 }
 0x189   : > { %3282 = vmatprep.mubr.msk.bf16.mxu0 %vm3714_vm1, %v3713_v17  ;;  %3290 = vmatprep.mubr.msk.bf16.mxu1 %vm3714_vm1, %v3713_v17  ;;  %v3579_v39 = vld [vmem:[%s3952_s19 + $0x20] sm:$0xff]   ;;  %v3580_v40 = vld [vmem:[%s3952_s19 + $0x30] sm:$0xff]   ;;  %v3581_v41 = vld [vmem:[%s3952_s19 + $0x28] sm:$0xff]   ;;  %s4449_s21 = sld [smem:[#allocation18_spill]]  ;;  %s4451_s9 = scalar_lea.vmem %s4361_s12, %s3917_s5  ;;  %vm2623_vm5 = vcmask 523264  }
 0x18a   : > { %v3582_v42 = vld [vmem:[%s3952_s19 + $0x38] sm:$0xff]   ;;  %s4447_s19 = sld [smem:[#allocation22_spill]]  ;;  %s4453_s0 = scalar_lea.vmem %s4364_s15, %s3917_s5 }
 0x18d   : > { %v3559_v16 = vld [vmem:[%s4445_s1] sm:$0xff]   ;;  %v3560_v18 = vld [vmem:[%s4445_s1 + $0x10] sm:$0xff]   ;;  %v3561_v19 = vld [vmem:[%s4445_s1 + $0x8] sm:$0xff]  }
 0x18e   : > { %3279 = vmatpush3.bf16.msra.mxu0 %v3559_v16  ;;  %3287 = vmatpush3.bf16.msra.mxu1 %v3560_v18  ;;  %v3562_v20 = vld [vmem:[%s4445_s1 + $0x18] sm:$0xff]   ;;  %v4030_v21 = vld [vmem:[#allocation2] sm:$0xff]  ;;  %v3564_v24 = vld [vmem:[%s4445_s1 + $0x30] sm:$0xff]  }
 0x18f   : > { %3280 = vmatprep.subr.bf16.mxu0 %v3713_v17  ;;  %3288 = vmatprep.subr.bf16.mxu1 %v3713_v17  ;;  %v4034_v22 = vpack.c.bf16 %v4030_v21, %v4030_v21  ;;  %v3563_v23 = vld [vmem:[%s4445_s1 + $0x20] sm:$0xff]   ;;  %v3565_v25 = vld [vmem:[%s4445_s1 + $0x28] sm:$0xff]   ;;  %v3566_v26 = vld [vmem:[%s4445_s1 + $0x38] sm:$0xff]  }
 0x190   : > { %v3567_v27 = vld [vmem:[%s4446_s23] sm:$0xff]   ;;  %v3568_v28 = vld [vmem:[%s4446_s23 + $0x10] sm:$0xff]   ;;  %v3569_v29 = vld [vmem:[%s4446_s23 + $0x8] sm:$0xff]  }
 0x191   : > { %v3570_v30 = vld [vmem:[%s4446_s23 + $0x18] sm:$0xff]   ;;  %v3571_v31 = vld [vmem:[%s4446_s23 + $0x20] sm:$0xff]   ;;  %v3572_v32 = vld [vmem:[%s4446_s23 + $0x30] sm:$0xff]  }
 0x192   : > { %3281 = vmatpush3.bf16.msra.mxu0 %v3561_v19  ;;  %3289 = vmatpush3.bf16.msra.mxu1 %v3562_v20  ;;  %v3573_v33 = vld [vmem:[%s4446_s23 + $0x28] sm:$0xff]   ;;  %v3574_v34 = vld [vmem:[%s4446_s23 + $0x38] sm:$0xff]   ;;  %v3129_v59 = vld [vmem:[%s4447_s19] ss:$0 sm:$0xff] }
 0x193   : > { %3294 = vmatprep.subr.bf16.mxu0 %v3713_v17  ;;  %3302 = vmatprep.subr.bf16.mxu1 %v3713_v17  ;;  %v3130_v60 = vld [vmem:[%s4447_s19 + $0x1] ss:$0 sm:$0xff]  ;;  %v3113_v7 = vld [vmem:[%s4448_s7] ss:$0 sm:$0xff]  ;;  %v3131_v13 = vld [vmem:[%s4447_s19 + $0x2] ss:$0 sm:$0xff] }
 0x194   : > { %v3114_v10 = vld [vmem:[%s4448_s7 + $0x1] ss:$0 sm:$0xff]  ;;  %v3132_v15 = vld [vmem:[%s4447_s19 + $0x3] ss:$0 sm:$0xff] }
 0x195   : > { %3283 = vmatmul.mubr.msk.bf16.vlgmr.msra.gmra.mrb[0].mxu0 %vm1126_vm2, %v4034_v22  ;;  %3291 = vmatmul.mubr.msk.bf16.vlgmr.msra.gmra.mrb[0].mxu1 %vm1126_vm2, %v4034_v22 }
 0x196   : > { %3295 = vmatpush3.bf16.msra.mxu0 %v3563_v23  ;;  %3303 = vmatpush3.bf16.msra.mxu1 %v3564_v24 }
 0x197   : > { %3296 = vmatprep.subr.bf16.mxu0 %v3713_v17  ;;  %3304 = vmatprep.subr.bf16.mxu1 %v3713_v17 }
 0x198   : > { %3298 = vmatprep.mubr.msk.bf16.mxu0 %vm3714_vm1, %v3713_v17  ;;  %3306 = vmatprep.mubr.msk.bf16.mxu1 %vm3714_vm1, %v3713_v17 }
 0x19a   : > { %3297 = vmatpush3.bf16.msra.mxu0 %v3565_v25  ;;  %3305 = vmatpush3.bf16.msra.mxu1 %v3566_v26 }
 0x19b   : > { %3310 = vmatprep.subr.bf16.mxu0 %v3713_v17  ;;  %3318 = vmatprep.subr.bf16.mxu1 %v3713_v17 }
 0x19d   : > { %3299 = vmatmul.mubr.msk.bf16.vlgmr.msra.gmra.mrb[4].mxu0 %vm1126_vm2, %v4034_v22  ;;  %3307 = vmatmul.mubr.msk.bf16.vlgmr.msra.gmra.mrb[4].mxu1 %vm1126_vm2, %v4034_v22 }
 0x19e   : > { %3311 = vmatpush3.bf16.msra.mxu0 %v3567_v27  ;;  %3319 = vmatpush3.bf16.msra.mxu1 %v3568_v28 }
 0x19f   : > { %3312 = vmatprep.subr.bf16.mxu0 %v3713_v17  ;;  %3320 = vmatprep.subr.bf16.mxu1 %v3713_v17 }
 0x1a0   : > { %3314 = vmatprep.mubr.msk.bf16.mxu0 %vm3714_vm1, %v3713_v17  ;;  %3322 = vmatprep.mubr.msk.bf16.mxu1 %vm3714_vm1, %v3713_v17 }
 0x1a2   : > { %3313 = vmatpush3.bf16.msra.mxu0 %v3569_v29  ;;  %3321 = vmatpush3.bf16.msra.mxu1 %v3570_v30 }
 0x1a3   : > { %3326 = vmatprep.subr.bf16.mxu0 %v3713_v17  ;;  %3334 = vmatprep.subr.bf16.mxu1 %v3713_v17 }
 0x1a5   : > { %3315 = vmatmul.mubr.msk.bf16.vlgmr.msra.gmra.mrb[8].mxu0 %vm1126_vm2, %v4034_v22  ;;  %3323 = vmatmul.mubr.msk.bf16.vlgmr.msra.gmra.mrb[8].mxu1 %vm1126_vm2, %v4034_v22 }
 0x1a6   : > { %3327 = vmatpush3.bf16.msra.mxu0 %v3571_v31  ;;  %3335 = vmatpush3.bf16.msra.mxu1 %v3572_v32  ;;  %v3115_v31 = vld [vmem:[%s4448_s7 + $0x2] ss:$0 sm:$0xff] }
 0x1a7   : > { %3328 = vmatprep.subr.bf16.mxu0 %v3713_v17  ;;  %3336 = vmatprep.subr.bf16.mxu1 %v3713_v17 }
 0x1a8   : > { %3330 = vmatprep.mubr.msk.bf16.mxu0 %vm3714_vm1, %v3713_v17  ;;  %3338 = vmatprep.mubr.msk.bf16.mxu1 %vm3714_vm1, %v3713_v17 }
 0x1aa   : > { %3329 = vmatpush3.bf16.msra.mxu0 %v3573_v33  ;;  %3337 = vmatpush3.bf16.msra.mxu1 %v3574_v34  ;;  %v3116_v34 = vld [vmem:[%s4448_s7 + $0x3] ss:$0 sm:$0xff] }
 0x1ab   : > { %3342 = vmatprep.subr.bf16.mxu0 %v3713_v17  ;;  %3350 = vmatprep.subr.bf16.mxu1 %v3713_v17 }
 0x1ad   : > { %3331 = vmatmul.mubr.msk.bf16.vlgmr.msra.gmra.mrb[12].mxu0 %vm1126_vm2, %v4034_v22  ;;  %3339 = vmatmul.mubr.msk.bf16.vlgmr.msra.gmra.mrb[12].mxu1 %vm1126_vm2, %v4034_v22 }
 0x1ae   : > { %3343 = vmatpush3.bf16.msra.mxu0 %v3575_v35  ;;  %3346 = vmatprep.mubr.msk.bf16.mxu0 %vm3714_vm1, %v3713_v17 }
 0x1af   : > { %3344 = vmatprep.subr.bf16.mxu0 %v3713_v17  ;;  %3354 = vmatprep.mubr.msk.bf16.mxu1 %vm3714_vm1, %v3713_v17 }
 0x1b0   : > { %3351 = vmatpush3.bf16.msra.mxu1 %v3576_v36 }
 0x1b1   : > { %3352 = vmatprep.subr.bf16.mxu1 %v3713_v17 }
 0x1b2   : > { %3345 = vmatpush3.bf16.msra.mxu0 %v3577_v37 }
 0x1b3   : > { %3358 = vmatprep.subr.bf16.mxu0 %v3713_v17 }
 0x1b4   : > { %3353 = vmatpush3.bf16.msra.mxu1 %v3578_v38 }
 0x1b5   : > { %3347 = vmatmul.mubr.msk.bf16.vlgmr.msra.gmra.mrb[16].mxu0 %vm1126_vm2, %v4034_v22  ;;  %3366 = vmatprep.subr.bf16.mxu1 %v3713_v17 }
 0x1b6   : > { %3362 = vmatprep.mubr.msk.bf16.mxu0 %vm3714_vm1, %v3713_v17  ;;  %3359 = vmatpush3.bf16.msra.mxu0 %v3579_v39 }
 0x1b7   : > { %3355 = vmatmul.mubr.msk.bf16.vlgmr.msra.gmra.mrb[16].mxu1 %vm1126_vm2, %v4034_v22  ;;  %3360 = vmatprep.subr.bf16.mxu0 %v3713_v17 }
 0x1b8   : > { %3367 = vmatpush3.bf16.msra.mxu1 %v3580_v40  ;;  %3370 = vmatprep.mubr.msk.bf16.mxu1 %vm3714_vm1, %v3713_v17 }
 0x1b9   : > { %3368 = vmatprep.subr.bf16.mxu1 %v3713_v17 }
 0x1ba   : > { %3361 = vmatpush3.bf16.msra.mxu0 %v3581_v41  ;;  %v3145_v41 = vld [vmem:[%s3957_s2] ss:$0 sm:$0xff] }
 0x1bb   : > { %3374 = vmatprep.subr.bf16.mxu0 %v3713_v17 }
 0x1bc   : > { %3369 = vmatpush3.bf16.msra.mxu1 %v3582_v42 }
 0x1bd   : > { %3380 = vmatprep.subr.bf16.mxu1 %v3713_v17  ;;  %3363 = vmatmul.mubr.msk.bf16.vlgmr.msra.gmra.mrb[20].mxu0 %vm1126_vm2, %v4034_v22 }
 0x1be   : > { %3376 = vmatprep.mubr.msk.bf16.mxu0 %vm3714_vm1, %v3713_v17 }
 0x1bf   : > { %3371 = vmatmul.mubr.msk.bf16.vlgmr.msra.gmra.mrb[20].mxu1 %vm1126_vm2, %v4034_v22 }
 0x1c0   : > { %3382 = vmatprep.mubr.msk.bf16.mxu1 %vm3714_vm1, %v3713_v17 }
 0x268   : > { %v1164_v43 = vpop.f32.mrb[0].mxu0  ;;  %v1216_v45 = vpop.f32.mrb[0].mxu1 }
 0x269   : > { %v3284_v44 = vpop.f32.mrb[1].mxu0  ;;  %v3292_v47 = vpop.f32.mrb[1].mxu1  ;;  %v1165_v14 = vadd.f32 %v3113_v7, %v1164_v43  ;;  %v1217_v16 = vadd.f32 %v3114_v10, %v1216_v45  ;;  %v3146_v43 = vld [vmem:[%s3957_s2 + $0x1] ss:$0 sm:$0xff] }
 0x26a   : > { %v1167_v46 = vpop.f32.mrb[2].mxu0  ;;  %v1219_v49 = vpop.f32.mrb[2].mxu1 }
 0x26b   : > { %v3285_v48 = vpop.f32.mrb[3].mxu0  ;;  %v3293_v50 = vpop.f32.mrb[3].mxu1  ;;  %v1830_v26 = vpack.c.bf16 %v1165_v14, %v1165_v14  ;;  %v1831_v30 = vpack.c.bf16 %v1217_v16, %v1217_v16 }
 0x270   : > { %v1268_v51 = vpop.f32.mrb[4].mxu0  ;;  %v1320_v53 = vpop.f32.mrb[4].mxu1 }
 0x271   : > { %v3300_v52 = vpop.f32.mrb[5].mxu0  ;;  %v3308_v55 = vpop.f32.mrb[5].mxu1  ;;  %v1269_v37 = vadd.f32 %v3115_v31, %v1268_v51  ;;  %v1321_v38 = vadd.f32 %v3116_v34, %v1320_v53 }
 0x272   : > { %v1271_v54 = vpop.f32.mrb[6].mxu0  ;;  %v1323_v57 = vpop.f32.mrb[6].mxu1 }
 0x273   : > { %v3301_v56 = vpop.f32.mrb[7].mxu0  ;;  %v3309_v58 = vpop.f32.mrb[7].mxu1  ;;  %v1832_v39 = vpack.c.bf16 %v1269_v37, %v1269_v37  ;;  %v1833_v40 = vpack.c.bf16 %v1321_v38, %v1321_v38 }
 0x278   : > { %v1416_v61 = vpop.f32.mrb[8].mxu0  ;;  %v1468_v63 = vpop.f32.mrb[8].mxu1 }
 0x279   : > { %v1417_v62 = vadd.f32 %v3129_v59, %v1416_v61  ;;  %v3316_v0 = vpop.f32.mrb[9].mxu0  ;;  %v1469_v1 = vadd.f32 %v3130_v60, %v1468_v63  ;;  %v3324_v3 = vpop.f32.mrb[9].mxu1 }
 0x27a   : > { %v1419_v2 = vpop.f32.mrb[10].mxu0  ;;  %v1471_v6 = vpop.f32.mrb[10].mxu1 }
 0x27b   : > { %v1834_v4 = vpack.c.bf16 %v1417_v62, %v1417_v62  ;;  %v3317_v5 = vpop.f32.mrb[11].mxu0  ;;  %v1835_v8 = vpack.c.bf16 %v1469_v1, %v1469_v1  ;;  %v3325_v9 = vpop.f32.mrb[11].mxu1  ;;  %v2027_v2 = vld [vmem:[%s4449_s21] sm:$0xff] }
 0x27d   : > { %v1843_v11 = vsel %vm1838_vm3, %v1834_v4, 0  ;;  %v1889_v12 = vsel %vm1838_vm3, %v1835_v8, 0 }
 0x27e   : > { %3375 = vmatpush3.bf16.xpose.msra.mxu0 %v1843_v11  ;;  %3381 = vmatpush3.bf16.xpose.msra.mxu1 %v1889_v12 }
 0x27f   : > { %3386 = vmatprep.subr.bf16.mxu0 %v3713_v17  ;;  %3392 = vmatprep.subr.bf16.mxu1 %v3713_v17 }
 0x280   : > { %v1520_v18 = vpop.f32.mrb[12].mxu0  ;;  %v1572_v20 = vpop.f32.mrb[12].mxu1 }
 0x281   : > { %v1521_v19 = vadd.f32 %v3131_v13, %v1520_v18  ;;  %v3332_v22 = vpop.f32.mrb[13].mxu0  ;;  %v1573_v23 = vadd.f32 %v3132_v15, %v1572_v20  ;;  %v3340_v25 = vpop.f32.mrb[13].mxu1 }
 0x282   : > { %v1523_v24 = vpop.f32.mrb[14].mxu0  ;;  %v1575_v29 = vpop.f32.mrb[14].mxu1 }
 0x283   : > { %v1836_v27 = vpack.c.bf16 %v1521_v19, %v1521_v19  ;;  %v3333_v28 = vpop.f32.mrb[15].mxu0  ;;  %v1837_v32 = vpack.c.bf16 %v1573_v23, %v1573_v23  ;;  %v3341_v33 = vpop.f32.mrb[15].mxu1 }
 0x285   : > { %v1935_v35 = vsel %vm1838_vm3, %v1836_v27, 0  ;;  %3377 = vmatmul.mubr.msk.bf16.vlgmr.msra.gmra.mrb[24].mxu0 %vm1838_vm3, %v1830_v26  ;;  %v1981_v36 = vsel %vm1838_vm3, %v1837_v32, 0  ;;  %3383 = vmatmul.mubr.msk.bf16.vlgmr.msra.gmra.mrb[24].mxu1 %vm1838_vm3, %v1831_v30 }
 0x286   : > { %3387 = vmatpush3.bf16.xpose.msra.mxu0 %v1935_v35  ;;  %3393 = vmatpush3.bf16.xpose.msra.mxu1 %v1981_v36 }
 0x287   : > { %3388 = vmatprep.mubr.msk.bf16.mxu0 %vm3714_vm1, %v3713_v17  ;;  %3394 = vmatprep.mubr.msk.bf16.mxu1 %vm3714_vm1, %v3713_v17 }
 0x288   : > { %3398 = vmatprep.subr.bf16.mxu0 %v3713_v17  ;;  %3404 = vmatprep.subr.bf16.mxu1 %v3713_v17  ;;  %v1668_v42 = vpop.f32.mrb[16].mxu0 }
 0x289   : > { %v1669_v44 = vadd.f32 %v3145_v41, %v1668_v42  ;;  %v3348_v45 = vpop.f32.mrb[17].mxu0 }
 0x28a   : > { %v1671_v46 = vpop.f32.mrb[18].mxu0  ;;  %v1720_v47 = vpop.f32.mrb[16].mxu1 }
 0x28b   : > { %v2080_v48 = vpack.c.bf16 %v1669_v44, %v1669_v44  ;;  %v3349_v49 = vpop.f32.mrb[19].mxu0  ;;  %v1721_v50 = vadd.f32 %v3146_v43, %v1720_v47  ;;  %v3356_v51 = vpop.f32.mrb[17].mxu1 }
 0x28c   : > { %v1723_v52 = vpop.f32.mrb[18].mxu1 }
 0x28d   : > { %3389 = vmatmul.mubr.msk.bf16.vlgmr.msra.gmra.mrb[28].mxu0 %vm1838_vm3, %v1832_v39  ;;  %3395 = vmatmul.mubr.msk.bf16.vlgmr.msra.gmra.mrb[28].mxu1 %vm1838_vm3, %v1833_v40  ;;  %v2089_v53 = vsel %vm2087_vm4, %v2080_v48, 0  ;;  %v2081_v54 = vpack.c.bf16 %v1721_v50, %v1721_v50  ;;  %v3357_v55 = vpop.f32.mrb[19].mxu1 }
 0x28e   : > { %3400 = vmatprep.mubr.msk.bf16.mxu0 %vm3714_vm1, %v3713_v17  ;;  %3406 = vmatprep.mubr.msk.bf16.mxu1 %vm3714_vm1, %v3713_v17 }
 0x28f   : > { %3399 = vmatpush3.bf16.msra.mxu0 %v2089_v53  ;;  %v2135_v56 = vsel %vm2087_vm4, %v2081_v54, 0  ;;  %v3147_v54 = vld [vmem:[%s3957_s2 + $0x2] ss:$0 sm:$0xff] }
 0x290   : > { %3410 = vmatprep.subr.bf16.mxu0 %v3713_v17  ;;  %3405 = vmatpush3.bf16.msra.mxu1 %v2135_v56  ;;  %v4160_v57 = vpop.f32.mrb[20].mxu0 }
 0x291   : > { %3416 = vmatprep.subr.bf16.mxu1 %v3713_v17  ;;  %v3364_v59 = vpop.f32.mrb[21].mxu0  ;;  %v1773_v55 = vadd.f32 %v3147_v54, %v4160_v57 }
 0x292   : > { %v4162_v58 = vpop.f32.mrb[20].mxu1  ;;  %v1775_v61 = vpop.f32.mrb[22].mxu0  ;;  %v3148_v59 = vld [vmem:[%s3957_s2 + $0x3] ss:$0 sm:$0xff]  ;;  %s4455_s2 = sld [smem:[#allocation8_spill]] }
 0x293   : > { %v3372_v60 = vpop.f32.mrb[21].mxu1  ;;  %v3365_v63 = vpop.f32.mrb[23].mxu0  ;;  %v2082_v61 = vpack.c.bf16 %v1773_v55, %v1773_v55 }
 0x294   : > { %v1827_v62 = vpop.f32.mrb[22].mxu1 }
 0x295   : > { %v3373_v0 = vpop.f32.mrb[23].mxu1  ;;  %v1825_v62 = vadd.f32 %v3148_v59, %v4162_v58  ;;  %v2269_v58 = vld [vmem:[%s3967_s30] sm:$0xf] }
 0x298   : > { %p3188_p1 = scmp.ne.s32.totalorder %s4455_s2, 1 }
 0x299   : > { %s4456_s20 = sld [smem:[#allocation36_spill]] (!%p3188_p1)  ;;  %vm3716_vm6 = vmmov (!%p3188_p1), 0   ;;  %s4458_s6 = sld [smem:[#allocation37_spill]] (!%p3188_p1) }
 0x29a   : > { %s4459_s1 = sld [smem:[#allocation39_spill]] (!%p3188_p1) }
 0x358   : > { %v1879_v1 = vpop.f32.mrb[24].mxu0  ;;  %v1925_v4 = vpop.f32.mrb[24].mxu1 }
 0x359   : > { %v2023_v3 = vmul.f32 0.35355338, %v1879_v1  ;;  %v3378_v5 = vpop.f32.mrb[25].mxu0  ;;  %v2024_v6 = vmul.f32 0.35355338, %v1925_v4  ;;  %v3384_v7 = vpop.f32.mrb[25].mxu1  ;;  %v2083_v4 = vpack.c.bf16 %v1825_v62, %v1825_v62 }
 0x35a   : > { %v1882_v8 = vpop.f32.mrb[26].mxu0  ;;  %v1928_v9 = vpop.f32.mrb[26].mxu1 }
 0x35b   : > { %v3379_v10 = vpop.f32.mrb[27].mxu0  ;;  %v2028_v11 = vadd.f32 %v2027_v2, %v2023_v3  ;;  %v3385_v12 = vpop.f32.mrb[27].mxu1  ;;  %v2029_v14 = vadd.f32 %v2027_v2, %v2024_v6  ;;  %v2181_v3 = vsel %vm2087_vm4, %v2082_v61, 0  ;;  %v2227_v7 = vsel %vm2087_vm4, %v2083_v4, 0 }
 0x35c   : > { %v2281_v10 = vsel %vm2087_vm4, %v2269_v58, 0 }
 0x35d   : > { %v2032_v13 = vsel %vm1838_vm3, %v2028_v11, -inf  ;;  %v2035_v20 = vsel %vm1838_vm3, %v2029_v14, -inf }
 0x35e   : > { %2033 = vmax.xlane.f32.xlu0 %v2032_v13 }
 0x360   : > { %v1971_v15 = vpop.f32.mrb[28].mxu0  ;;  %v2017_v18 = vpop.f32.mrb[28].mxu1 }
 0x361   : > { %v2025_v16 = vmul.f32 0.35355338, %v1971_v15  ;;  %v3390_v19 = vpop.f32.mrb[29].mxu0  ;;  %v2026_v22 = vmul.f32 0.35355338, %v2017_v18  ;;  %v3396_v23 = vpop.f32.mrb[29].mxu1 }
 0x362   : > { %2036 = vmax.xlane.f32.xlu0 %v2035_v20  ;;  %v1974_v24 = vpop.f32.mrb[30].mxu0  ;;  %v2020_v25 = vpop.f32.mrb[30].mxu1 }
 0x363   : > { %v3391_v26 = vpop.f32.mrb[31].mxu0  ;;  %v2030_v27 = vadd.f32 %v2027_v2, %v2025_v16  ;;  %v3397_v28 = vpop.f32.mrb[31].mxu1  ;;  %v2031_v30 = vadd.f32 %v2027_v2, %v2026_v22  ;;  %v2271_v16 = vld [vmem:[%s3967_s30 + $0x8] sm:$0xf]  ;;  %v2272_v24 = vld [vmem:[%s3967_s30 + $0xc] sm:$0xf] }
 0x364   : > { %v2373_v22 = vsel %vm2087_vm4, %v2271_v16, 0 }
 0x365   : > { %v2038_v29 = vsel %vm1838_vm3, %v2030_v27, -inf  ;;  %v2041_v31 = vsel %vm1838_vm3, %v2031_v30, -inf }
 0x366   : > { %2039 = vmax.xlane.f32.xlu1 %v2038_v29  ;;  %v2419_v29 = vsel %vm2087_vm4, %v2272_v24, 0  ;;  %v3586_v24 = vld [vmem:[%s3990_s10 + $0x8] sm:$0xff]  }
 0x36a   : > { %2042 = vmax.xlane.f32.xlu1 %v2041_v31 }
 0x3eb   : > { %v2034_v32 = vpop.xlane.xlu0 %2033 }
 0x3ec   : > { %v2044_v33 = vsub.f32 %v2028_v11, %v2034_v32 }
 0x3ee   : > { %v2048_v34 = vmul.f32 1.442695, %v2044_v33 }
 0x3ef   : > { %v2037_v35 = vpop.xlane.xlu0 %2036 }
 0x3f0   : > { %3589 = vpow2.f32 %v2048_v34  ;;  %v2045_v36 = vsub.f32 %v2029_v14, %v2037_v35  ;;  %v2270_v14 = vld [vmem:[%s3967_s30 + $0x4] sm:$0xf] }
 0x3f1   : > { %v2327_v15 = vsel %vm2087_vm4, %v2270_v14, 0 }
 0x3f2   : > { %v2050_v37 = vmul.f32 1.442695, %v2045_v36 }
 0x3f3   : > { %v2040_v38 = vpop.xlane.xlu1 %2039 }
 0x3f4   : > { %3591 = vpow2.f32 %v2050_v37  ;;  %v2046_v39 = vsub.f32 %v2030_v27, %v2040_v38 }
 0x3f6   : > { %v2052_v40 = vmul.f32 1.442695, %v2046_v39 }
 0x3f7   : > { %v2043_v41 = vpop.xlane.xlu1 %2042 }
 0x3f8   : > { %3593 = vpow2.f32 %v2052_v40  ;;  %v2047_v42 = vsub.f32 %v2031_v30, %v2043_v41 }
 0x3fa   : > { %v3590_v43 = vpop.eup %3589  ;;  %v2054_v44 = vmul.f32 1.442695, %v2047_v42 }
 0x3fb   : > { %v2056_v45 = vsel %vm1838_vm3, %v3590_v43, 0.0 }
 0x3fc   : > { %3595 = vpow2.f32 %v2054_v44  ;;  %2057 = vadd.xlane.f32.xlu0 %v2056_v45 }
 0x3fe   : > { %v3592_v46 = vpop.eup %3591 }
 0x3ff   : > { %v2059_v47 = vsel %vm1838_vm3, %v3592_v46, 0.0 }
 0x400   : > { %2060 = vadd.xlane.f32.xlu1 %v2059_v47 }
 0x402   : > { %v3594_v48 = vpop.eup %3593 }
 0x403   : > { %v2062_v49 = vsel %vm1838_vm3, %v3594_v48, 0.0 }
 0x404   : > { %2063 = vadd.xlane.f32.xlu0 %v2062_v49 }
 0x406   : > { %v3596_v50 = vpop.eup %3595 }
 0x407   : > { %v2065_v51 = vsel %vm1838_vm3, %v3596_v50, 0.0 }
 0x408   : > { %2066 = vadd.xlane.f32.xlu1 %v2065_v51 }
 0x489   : > { %v2058_v52 = vpop.xlane.xlu0 %2057 }
 0x48a   : > { %3597 = vrcp.f32 %v2058_v52 }
 0x48d   : > { %v2061_v53 = vpop.xlane.xlu1 %2060 }
 0x48e   : > { %3599 = vrcp.f32 %v2061_v53 }
 0x491   : > { %v2064_v56 = vpop.xlane.xlu0 %2063 }
 0x492   : > { %3601 = vrcp.f32 %v2064_v56 }
 0x494   : > { %v3598_v60 = vpop.eup %3597 }
 0x495   : > { %v2072_v63 = vmul.f32 %v3598_v60, %v3590_v43  ;;  %v2067_v0 = vpop.xlane.xlu1 %2066 }
 0x496   : > { %3603 = vrcp.f32 %v2067_v0 }
 0x497   : > { %v2076_v1 = vpack.c.bf16 %v2072_v63, %v2072_v63  ;;  %v3173_v63 = vld [vmem:[%s4450_s25] ss:$0 sm:$0xff] }
 0x498   : > { %v3600_v2 = vpop.eup %3599 }
 0x499   : > { %v2073_v5 = vmul.f32 %v3600_v2, %v3592_v46  ;;  %3401 = vmatmul.mubr.msk.bf16.vlgmr.msra.gmra.mrb[32].mxu0 %vm1838_vm3, %v2076_v1 }
 0x49a   : > { %3411 = vmatpush3.bf16.msra.mxu0 %v2181_v3  ;;  %3412 = vmatprep.mubr.msk.bf16.mxu0 %vm3714_vm1, %v3713_v17 }
 0x49b   : > { %v2077_v57 = vpack.c.bf16 %v2073_v5, %v2073_v5  ;;  %3422 = vmatprep.subr.bf16.mxu0 %v3713_v17 }
 0x49c   : > { %v3602_v6 = vpop.eup %3601 }
 0x49d   : > { %v2074_v8 = vmul.f32 %v3602_v6, %v3594_v48  ;;  %3407 = vmatmul.mubr.msk.bf16.vlgmr.msra.gmra.mrb[32].mxu1 %vm1838_vm3, %v2077_v57 }
 0x49e   : > { %3417 = vmatpush3.bf16.msra.mxu1 %v2227_v7  ;;  %3418 = vmatprep.mubr.msk.bf16.mxu1 %vm3714_vm1, %v3713_v17 }
 0x49f   : > { %v2078_v9 = vpack.c.bf16 %v2074_v8, %v2074_v8  ;;  %3428 = vmatprep.subr.bf16.mxu1 %v3713_v17 }
 0x4a0   : > { %v3604_v11 = vpop.eup %3603 }
 0x4a1   : > { %v2075_v12 = vmul.f32 %v3604_v11, %v3596_v50  ;;  %3413 = vmatmul.mubr.msk.bf16.vlgmr.msra.gmra.mrb[36].mxu0 %vm1838_vm3, %v2078_v9  ;;  %v3584_v11 = vld [vmem:[%s3980_s28 + $0x8] sm:$0xff]  }
 0x4a2   : > { %3423 = vmatpush3.bf16.msra.mxu0 %v2281_v10  ;;  %3424 = vmatprep.mubr.msk.bf16.mxu0 %vm3714_vm1, %v3713_v17  ;;  %v3583_v10 = vld [vmem:[%s3980_s28] sm:$0xff]   ;;  %s4452_s28 = scalar_lea.vmem %s4362_s13, %s3917_s5 }
 0x4a3   : > { %v2079_v13 = vpack.c.bf16 %v2075_v12, %v2075_v12  ;;  %3434 = vmatprep.subr.bf16.mxu0 %v3713_v17 }
 0x4a5   : > { %3419 = vmatmul.mubr.msk.bf16.vlgmr.msra.gmra.mrb[36].mxu1 %vm1838_vm3, %v2079_v13 }
 0x4a6   : > { %3430 = vmatprep.mubr.msk.bf16.mxu1 %vm3714_vm1, %v3713_v17  ;;  %3429 = vmatpush3.bf16.msra.mxu1 %v2327_v15  ;;  %v3174_v15 = vld [vmem:[%s4451_s9] ss:$0 sm:$0xff]  ;;  %s4457_s9 = sld [smem:[#allocation38_spill]] (!%p3188_p1) }
 0x4a7   : > { %3440 = vmatprep.subr.bf16.mxu1 %v3713_v17 }
 0x56c   : > { %v2125_v18 = vpop.f32.mrb[32].mxu0 }
 0x56d   : > { %v2273_v19 = vpack.c.bf16 %v2125_v18, %v2125_v18  ;;  %v3402_v20 = vpop.f32.mrb[33].mxu0  ;;  %v3175_v18 = vld [vmem:[%s4452_s28] ss:$0 sm:$0xff] }
 0x56e   : > { %v2128_v23 = vpop.f32.mrb[34].mxu0 }
 0x56f   : > { %v3403_v25 = vpop.f32.mrb[35].mxu0  ;;  %3425 = vmatmul.mubr.msk.bf16.vlgmr.msra.gmra.mrb[40].mxu0 %vm1838_vm3, %v2273_v19  ;;  %v3585_v23 = vld [vmem:[%s3990_s10] sm:$0xff]  }
 0x570   : > { %v2171_v26 = vpop.f32.mrb[32].mxu1  ;;  %3435 = vmatpush3.bf16.msra.mxu0 %v2373_v22  ;;  %3436 = vmatprep.mubr.msk.bf16.mxu0 %vm3714_vm1, %v3713_v17  ;;  %v3587_v25 = vld [vmem:[%s3990_s10 + $0x10] sm:$0xff]  }
 0x571   : > { %v2274_v27 = vpack.c.bf16 %v2171_v26, %v2171_v26  ;;  %v3408_v28 = vpop.f32.mrb[33].mxu1  ;;  %3446 = vmatprep.subr.bf16.mxu0 %v3713_v17  ;;  %v3588_v26 = vld [vmem:[%s3990_s10 + $0x18] sm:$0xff]  }
 0x572   : > { %v2174_v30 = vpop.f32.mrb[34].mxu1 }
 0x573   : > { %v3409_v31 = vpop.f32.mrb[35].mxu1  ;;  %3431 = vmatmul.mubr.msk.bf16.vlgmr.msra.gmra.mrb[40].mxu1 %vm1838_vm3, %v2274_v27  ;;  %v3176_v27 = vld [vmem:[%s4453_s0] ss:$0 sm:$0xff] }
 0x574   : > { %v2217_v32 = vpop.f32.mrb[36].mxu0  ;;  %3441 = vmatpush3.bf16.msra.mxu1 %v2419_v29  ;;  %3442 = vmatprep.mubr.msk.bf16.mxu1 %vm3714_vm1, %v3713_v17 }
 0x575   : > { %v2275_v33 = vpack.c.bf16 %v2217_v32, %v2217_v32  ;;  %v3414_v34 = vpop.f32.mrb[37].mxu0  ;;  %3454 = vmatprep.subr.bf16.mxu1 %v3713_v17 }
 0x576   : > { %v2220_v35 = vpop.f32.mrb[38].mxu0 }
 0x577   : > { %v3415_v36 = vpop.f32.mrb[39].mxu0  ;;  %3437 = vmatmul.mubr.msk.bf16.vlgmr.msra.gmra.mrb[44].mxu0 %vm1838_vm3, %v2275_v33 }
 0x578   : > { %v2263_v37 = vpop.f32.mrb[36].mxu1  ;;  %3450 = vmatprep.mubr.msk.bf16.mxu0 %vm3714_vm1, %v3713_v17  ;;  %3447 = vmatpush3.bf16.msra.mxu0 %v3583_v10 }
 0x579   : > { %v2276_v38 = vpack.c.bf16 %v2263_v37, %v2263_v37  ;;  %v3420_v39 = vpop.f32.mrb[37].mxu1  ;;  %3448 = vmatprep.subr.bf16.mxu0 %v3713_v17 }
 0x57a   : > { %v2266_v40 = vpop.f32.mrb[38].mxu1 }
 0x57b   : > { %v3421_v41 = vpop.f32.mrb[39].mxu1  ;;  %3443 = vmatmul.mubr.msk.bf16.vlgmr.msra.gmra.mrb[44].mxu1 %vm1838_vm3, %v2276_v38 }
 0x57c   : > { %3462 = vmatprep.mubr.msk.bf16.mxu1 %vm3714_vm1, %v3713_v17  ;;  %3449 = vmatpush3.bf16.msra.mxu0 %v3584_v11 }
 0x57d   : > { %3455 = vmatpush3.bf16.msra.mxu1 %v3585_v23 }
 0x57e   : > { %3456 = vmatprep.subr.bf16.mxu1 %v3713_v17 }
 0x581   : > { %3457 = vmatpush3.bf16.msra.mxu1 %v3586_v24 }
 0x582   : > { %3458 = vmatprep.subr.bf16.mxu1 %v3713_v17 }
 0x585   : > { %3459 = vmatpush3.bf16.msra.mxu1 %v3587_v25 }
 0x586   : > { %3460 = vmatprep.subr.bf16.mxu1 %v3713_v17 }
 0x589   : > { %3461 = vmatpush3.bf16.msra.mxu1 %v3588_v26 }
 0x642   : > { %v2317_v42 = vpop.f32.mrb[40].mxu0 }
 0x643   : > { %v3426_v43 = vpop.f32.mrb[41].mxu0  ;;  %v2461_v47 = vsel %vm1126_vm2, %v2317_v42, 0.0  ;;  %v3180_v42 = vld [vmem:[%s1023_s24] ss:$0 sm:$0xff] }
 0x644   : > { %v2320_v44 = vpop.f32.mrb[42].mxu0 }
 0x645   : > { %v3427_v45 = vpop.f32.mrb[43].mxu0 }
 0x646   : > { %v2363_v46 = vpop.f32.mrb[40].mxu1 }
 0x647   : > { %v2462_v48 = vsel %vm1126_vm2, %v2363_v46, 0.0  ;;  %v3432_v49 = vpop.f32.mrb[41].mxu1 }
 0x648   : > { %v2463_v50 = vadd.f32 %v2462_v48, %v2461_v47  ;;  %v2366_v51 = vpop.f32.mrb[42].mxu1 }
 0x649   : > { %v3433_v52 = vpop.f32.mrb[43].mxu1 }
 0x64a   : > { %v2409_v53 = vpop.f32.mrb[44].mxu0 }
 0x64b   : > { %v2464_v54 = vsel %vm1126_vm2, %v2409_v53, 0.0  ;;  %v3438_v55 = vpop.f32.mrb[45].mxu0 }
 0x64c   : > { %v2465_v56 = vadd.f32 %v2464_v54, %v2463_v50  ;;  %v2412_v59 = vpop.f32.mrb[46].mxu0 }
 0x64d   : > { %v3439_v60 = vpop.f32.mrb[47].mxu0 }
 0x64e   : > { %v2455_v61 = vpop.f32.mrb[44].mxu1 }
 0x64f   : > { %v2466_v62 = vsel %vm1126_vm2, %v2455_v61, 0.0  ;;  %v3444_v0 = vpop.f32.mrb[45].mxu1  ;;  %v3186_v61 = vld [vmem:[%s1026_s8] ss:$0 sm:$0xff] }
 0x650   : > { %v2467_v1 = vadd.f32 %v2466_v62, %v2465_v56  ;;  %v2458_v2 = vpop.f32.mrb[46].mxu1 }
 0x651   : > { %v3445_v3 = vpop.f32.mrb[47].mxu1  ;;  %v3611_v2 = vld [vmem:[%s4456_s20] sm:$0xff] (!%p3188_p1)  }
 0x652   : > { %v2475_v4 = vadd.f32 %v3173_v63, %v2467_v1  ;;  %v3187_v63 = vld [vmem:[%s1029_s14] ss:$0 sm:$0xff]  ;;  %v3715_v3 = vmov (!%p3188_p1), 0.0  }
 0x653   : > { %3466 = vmatprep.subr.bf16.mxu0 (!%p3188_p1), %v3715_v3  ;;  %3474 = vmatprep.subr.bf16.mxu1 (!%p3188_p1), %v3715_v3 }
 0x654   : > { %v2476_v5 = vadd.f32 %v2475_v4, %v4030_v21  ;;  %v3612_v4 = vld [vmem:[%s4456_s20 + $0x8] sm:$0xff] (!%p3188_p1)  }
 0x656   : > { %v2479_v57 = vsel %vm1126_vm2, %v2476_v5, 0.0 }
 0x657   : > { %2480 = vadd.xlane.f32.xlu0 %v2479_v57  ;;  %v3613_v57 = vld [vmem:[%s4457_s9] sm:$0xff] (!%p3188_p1)  }
 0x6e4   : > { %v2481_v6 = vpop.xlane.xlu0 %2480 }
 0x6e5   : > { %v2483_v58 = vmul.f32 0.03125, %v2481_v6  ;;  %v3614_v6 = vld [vmem:[%s4457_s9 + $0x8] sm:$0xff] (!%p3188_p1)  }
 0x6e7   : > { %v2484_v7 = vsub.f32 %v2476_v5, %v2483_v58  ;;  %v2707_v58 = vld [vmem:[%s4458_s6] sm:$0x1] (!%p3188_p1) }
 0x6e9   : > { %v2485_v8 = vmul.f32 %v2484_v7, %v2484_v7 }
 0x6eb   : > { %v2486_v9 = vsel %vm1126_vm2, %v2485_v8, 0.0 }
 0x6ec   : > { %2487 = vadd.xlane.f32.xlu1 %v2486_v9 }
 0x779   : > { %v2488_v21 = vpop.xlane.xlu1 %2487 }
 0x77a   : > { %v2489_v12 = vmul.f32 0.03125, %v2488_v21 }
 0x77c   : > { %v2490_v13 = vadd.f32 1e-12, %v2489_v12 }
 0x77e   : > { %3605 = vrsqrt.f32 %v2490_v13  ;;  %v2769_v13 = vld [vmem:[%s4459_s1] sm:$0x1] (!%p3188_p1) }
 0x788   : > { %v3606_v14 = vpop.eup %3605 }
 0x789   : > { %v2492_v16 = vmul.f32 %v3606_v14, %v2484_v7 }
 0x78b   : > { %v2499_v19 = vmul.f32 %v3174_v15, %v2492_v16 }
 0x78d   : > { %v2506_v20 = vadd.f32 %v3175_v18, %v2499_v19 }
 0x78f   : > { %v2511_v22 = vpack.c.bf16 %v2506_v20, %v2506_v20 }
 0x791   : > { %3451 = vmatmul.mubr.msk.bf16.vlgmr.msra.gmra.mrb[48].mxu0 %vm1126_vm2, %v2511_v22 }
 0x792   : > { %3467 = vmatpush3.bf16.msra.mxu0 (!%p3188_p1), %v3611_v2  ;;  %3470 = vmatprep.mubr.msk.bf16.mxu0 (!%p3188_p1), %vm3716_vm6, %v3715_v3 }
 0x793   : > { %3468 = vmatprep.subr.bf16.mxu0 (!%p3188_p1), %v3715_v3 }
 0x796   : > { %3469 = vmatpush3.bf16.msra.mxu0 (!%p3188_p1), %v3612_v4 }
 0x864   : > { %v2568_v28 = vpop.f32.mrb[48].mxu0 }
 0x865   : > { %v2569_v29 = vadd.f32 %v3176_v27, %v2568_v28  ;;  %v3452_v30 = vpop.f32.mrb[49].mxu0 }
 0x866   : > { %v2571_v31 = vpop.f32.mrb[50].mxu0 }
 0x867   : > { %v2574_v32 = vmul.f32 %v2569_v29, %v2569_v29  ;;  %v3453_v33 = vpop.f32.mrb[51].mxu0 }
 0x869   : > { %v2575_v34 = vmul.f32 %v2574_v32, %v2569_v29 }
 0x86b   : > { %v2576_v35 = vmul.f32 0.044715, %v2575_v34 }
 0x86d   : > { %v2577_v36 = vadd.f32 %v2576_v35, %v2569_v29 }
 0x86f   : > { %v2578_v37 = vmul.f32 0.7978846, %v2577_v36 }
 0x871   : > { %3607 = vtanh.f32 %v2578_v37 }
 0x87b   : > { %v3608_v17 = vpop.eup %3607 }
 0x87c   : > { %v2580_v38 = vadd.f32 1.0, %v3608_v17 }
 0x87e   : > { %v2581_v39 = vmul.f32 0.5, %v2580_v38 }
 0x880   : > { %v2582_v40 = vmul.f32 %v2581_v39, %v2569_v29 }
 0x882   : > { %v2591_v41 = vpack.c.bf16 %v2582_v40, %v2582_v40 }
 0x884   : > { %3463 = vmatmul.mubr.msk.bf16.vlgmr.msra.gmra.mrb[48].mxu1 %vm2623_vm5, %v2591_v41 }
 0x885   : > { %3478 = vmatprep.mubr.msk.bf16.mxu1 (!%p3188_p1), %vm3716_vm6, %v3715_v3  ;;  %3475 = vmatpush3.bf16.msra.mxu1 (!%p3188_p1), %v3613_v57 }
 0x886   : > { %3476 = vmatprep.subr.bf16.mxu1 (!%p3188_p1), %v3715_v3 }
 0x889   : > { %3477 = vmatpush3.bf16.msra.mxu1 (!%p3188_p1), %v3614_v6 }
 0x957   : > { %v2661_v43 = vpop.f32.mrb[48].mxu1 }
 0x958   : > { %v2662_v44 = vadd.f32 %v3180_v42, %v2661_v43  ;;  %v3464_v45 = vpop.f32.mrb[49].mxu1 }
 0x959   : > { %v2664_v46 = vpop.f32.mrb[50].mxu1 }
 0x95a   : > { %v3465_v47 = vpop.f32.mrb[51].mxu1  ;;  %v2667_v48 = vadd.f32 %v2662_v44, %v2506_v20 }
 0x95c   : > { %v2670_v49 = vsel %vm1126_vm2, %v2667_v48, 0.0 }
 0x95d   : > { %2671 = vadd.xlane.f32.xlu0 %v2670_v49 }
 0x9ea   : > { %v2672_v50 = vpop.xlane.xlu0 %2671 }
 0x9eb   : > { %v2673_v51 = vmul.f32 0.03125, %v2672_v50 }
 0x9ed   : > { %v2674_v52 = vsub.f32 %v2667_v48, %v2673_v51 }
 0x9ef   : > { %v2675_v53 = vmul.f32 %v2674_v52, %v2674_v52 }
 0x9f1   : > { %v2676_v54 = vsel %vm1126_vm2, %v2675_v53, 0.0 }
 0x9f2   : > { %2677 = vadd.xlane.f32.xlu1 %v2676_v54 }
 0xa7f   : > { %v2678_v55 = vpop.xlane.xlu1 %2677 }
 0xa80   : > { %v2679_v56 = vmul.f32 0.03125, %v2678_v55 }
 0xa82   : > { %v2680_v59 = vadd.f32 1e-12, %v2679_v56 }
 0xa84   : > { %3609 = vrsqrt.f32 %v2680_v59 }
 0xa8e   : > { %v3610_v60 = vpop.eup %3609 }
 0xa8f   : > { %v2682_v62 = vmul.f32 %v3610_v60, %v2674_v52  ;;  %2701 = sbr.rel (%p3188_p1) target bundleno = 3153 (0xc51), region = 124 }
 0xa91   : > { %v2689_v0 = vmul.f32 %v3186_v61, %v2682_v62 }
 0xa93   : > { %v2696_v1 = vadd.f32 %v3187_v63, %v2689_v0 }
 0xa95   : > { %2697 = vst.msk [vmem:[#allocation2] sm:$0xff] %vm1126_vm2, %v2696_v1  ;;  %v2706_v5 = vpack.c.bf16 (!%p3188_p1), %v2696_v1, %v2696_v1 }
 0xa97   : > { %3471 = vmatmul.mubr.msk.bf16.vlgmr.msra.gmra.mrb[0].mxu0 %vm1126_vm2, %v2706_v5 }
 0xb6a   : > { %v2757_v7 = vpop.f32.mrb[0].mxu0 }
 0xb6b   : > { %v2758_v8 = vadd.f32 %v2757_v7, %v2707_v58  ;;  %v3472_v9 = vpop.f32.mrb[1].mxu0 }
 0xb6c   : > { %v2760_v10 = vpop.f32.mrb[2].mxu0 }
 0xb6d   : > { %3615 = vtanh.f32 %v2758_v8  ;;  %v3473_v11 = vpop.f32.mrb[3].mxu0 }
 0xb77   : > { %v3616_v21 = vpop.eup %3615 }
 0xb78   : > { %v2768_v12 = vpack.c.bf16 %v3616_v21, %v3616_v21 }
 0xb7a   : > { %3479 = vmatmul.mubr.msk.bf16.vlgmr.msra.gmra.mrb[0].mxu1 %vm1126_vm2, %v2768_v12 }
 0xc4d   : > { %v2819_v14 = vpop.f32.mrb[0].mxu1 }
 0xc4e   : > { %v2820_v15 = vadd.f32 %v2819_v14, %v2769_v13  ;;  %v3480_v16 = vpop.f32.mrb[1].mxu1 }
 0xc4f   : > { %v2822_v18 = vpop.f32.mrb[2].mxu1 }
 0xc50   : > { %2825 = vst [vmem:[%s4006_s4] sm:$0x1] %v2820_v15  ;;  %v3481_v19 = vpop.f32.mrb[3].mxu1 }
 0xc51 PF: > { %s4460_s24 = sld [smem:[#allocation9_spill]]  ;;  %s4462_s2 = sld [smem:[#allocation40_spill]] }
 0xc52   : > { %s2839_s8 = sshll.u32 %s4006_s4, 4  ;;  %s4464_s27 = sand.u32 1, %s3687_s26   ;;  %s2840_s8 = int_to_ptr.vmem [resolvable:$true] %s2839_s8 }
 0xc53   : > { %s2827_s14 = scalar_lea.sflag [#allocation4], %s4464_s27  ;;  %s3617_s5 = scalar_lea.vmem %s2840_s8, 16 }
 0xc54   : > { %p3618_p2 = scmp.ne.s32.totalorder %s2840_s8, %s3617_s5  ;;  %s3717_s29 = smov [#allocation3]  }
 0xc55   : > { %s3621_s22 = sshll.u32 %s3717_s29, 4  ;;  %s3622_s22 = int_to_ptr.vmem [resolvable:$false] %s3621_s22 }
 0xc56   : > { %p3619_p4 = pnand %p3618_p2, %p3892_p3  ;;  %s3623_s28 = scalar_lea.vmem %s3622_s22, 32 }
 0xc57   : > { %s3195_s19 = sshll.u32 %s4460_s24, 4  ;;  %s4463_s30 = smov %s4462_s2 }
 0xc58   : > { %s4299_s25 = scalar_lea.hbm %s4462_s2, %s3195_s19  ;;  %p3620_p5 = pneg %p3619_p4 }
 0xc59   : > { %p3624_p6 = scmp.lt.s32.totalorder %s2840_s8, %s3622_s22  ;;  %p3625_p7 = scmp.lt.s32.totalorder %s3623_s28, %s3617_s5 }
 0xc5b   : > { %p3626_p8 = por %p3625_p7, %p3624_p6 }
 0xc5d   : > { %p3627_p10 = pnand %p3626_p8, %p3620_p5 }
 0xc5f   : > { %3630 = shalt.err (!%p3627_p10)
}
 0xc60   : > { %s3631_s4 = scalar_lea.hbm %s4299_s25, 16  ;;  %s3635_s0 = scalar_lea.hbm %s4463_s30, 32 }
 0xc61   : > { %p3632_p11 = scmp.ne.s32.totalorder %s4299_s25, %s3631_s4  ;;  %p3636_p0 = scmp.lt.u32.totalorder %s4299_s25, %s4463_s30 }
 0xc62   : > { %p3637_p1 = scmp.lt.u32.totalorder %s3635_s0, %s3631_s4  ;;  %p3639_p4 = scmp.lt.u32.totalorder %s3631_s4, %s4299_s25 }
 0xc63   : > { %p3633_p12 = pnand %p3632_p11, %p3892_p3 }
 0xc64   : > { %p3638_p2 = por %p3637_p1, %p3636_p0 }
 0xc65   : > { %p3634_p13 = pneg %p3633_p12 }
 0xc66   : > { %p3640_p5 = por %p3639_p4, %p3638_p2 }
 0xc68   : > { %p3641_p6 = pnand %p3640_p5, %p3634_p13 }
 0xc6a   : > { %3644 = shalt.err (!%p3641_p6)
}
 0xc6b   : > { %3482 = dma.vmem_to_hbm [thread:$0]  (%p3892_p3), %s2840_s8, 16, %s4299_s25, %s2827_s14  }
 0xc6c PF: > { %s4465_s24 = sld [smem:[#allocation12_spill]]  ;;  %s4466_s19 = sld [smem:[#allocation6_spill]] }
 0xc72   : > { %p3488_p7 = scmp.ge.s32.totalorder %s4465_s24, 2  ;;  %s2851_s21 = sand.u32 1, %s4466_s19  }
 0xc73   : > { %s2852_s2 = scalar_lea.sflag [#allocation4], %s2851_s21 }
 0xc74   : > { %p3485_p8 = pnand %p3488_p7, %p3902_p9 }
 0xc76   : > { %3678 = dma.done.wait (!%p3485_p8), %s2852_s2, 16  }
 0xc77   : > { %3680 = vsyncadd (!%p3485_p8), %s2852_s2, 4294967280  ;;  %s37_s0 = sadd.s32 1, %s4465_s24   ;;  %s4468_s27 = sld [smem:[#allocation7_spill]] }
 0xc78   : > { %p34_p10 = scmp.ge.s32.totalorder %s37_s0, 6   ;;  %s4469_s29 = sld [smem:[#allocation17_spill]] }
 0xc79   : > { %s4470_s28 = sld [smem:[#allocation10_spill]]  ;;  %s4471_s6 = sld [smem:[#allocation11_spill]] }
 0xc7a   : > { %s4472_s2 = sld [smem:[#allocation13_spill]]  ;;  %s4473_s23 = sld [smem:[#allocation15_spill]] }
 0xc7b   : > { %s4474_s5 = smov %s3687_s26  ;;  %36 = sbr.rel (!%p34_p10) target bundleno = 24 (0x18), region = 210 }
 0xc7d   : > { %s4475_s26 = smov %s4468_s27 }
 0xc7e   : > { %s4476_s27 = smov %s4469_s29 }
 0xc80   : > { %s4477_s29 = smov %s4473_s23 }
 0xc82   :  { %2856 = vsyncpa [#allocation4], 1 }
 0xc83   :  { %2858 = vsyncpa [#allocation4 + $0x1], 1 }

</bundles_post_ra>
